<compile_context>
chip_gen: v7x
topology: tpu7x:2x2x1
jax: 0.10.0
libtpu: 0.0.40
codegen_flags: <defaults>
</compile_context>

<pallas_src>
import functools

import jax
import jax.numpy as jnp
from jax.experimental import pallas as pl
from jax.experimental.pallas import tpu as pltpu

SOC_COMP = 6
MON_COMP = 12
_LOG_2PI = 1.8378770664093453  # log(2*pi)


def _lrelu(v):
    # F.leaky_relu default negative_slope = 0.01
    return jnp.where(v >= 0, v, 0.01 * v)


def _cross_entropy_sum(logits, idx_col):
    """Sum over rows of cross-entropy. logits [B,C] f32, idx_col [B,1] i32 -> (1,1)."""
    b, c = logits.shape
    m = jnp.max(logits, axis=1, keepdims=True)
    lse = m + jnp.log(jnp.sum(jnp.exp(logits - m), axis=1, keepdims=True))
    iota = jax.lax.broadcasted_iota(jnp.int32, (b, c), 1)
    onehot = (iota == idx_col).astype(jnp.float32)
    picked = jnp.sum(logits * onehot, axis=1, keepdims=True)
    return jnp.sum(lse - picked, axis=0, keepdims=True)  # (1,1)


def _gmm_nll_sum(out, ncomp, t_col):
    """Sum over rows of -log_prob of MixtureSameFamily(Categorical, Normal)."""
    mus = out[:, :ncomp]
    logsig = 0.5 * out[:, ncomp:2 * ncomp]
    inv_sig = jnp.exp(-logsig)              # one exp; no divide, no log(sigs)
    wlog = out[:, 2 * ncomp:]
    mw = jnp.max(wlog, axis=1, keepdims=True)
    log_w = wlog - (mw + jnp.log(jnp.sum(jnp.exp(wlog - mw), axis=1, keepdims=True)))
    comp_lp = (-0.5 * ((t_col - mus) * inv_sig) ** 2 - logsig - 0.5 * _LOG_2PI)
    s = log_w + comp_lp
    ms = jnp.max(s, axis=1, keepdims=True)
    lp = ms + jnp.log(jnp.sum(jnp.exp(s - ms), axis=1, keepdims=True))
    return -jnp.sum(lp, axis=0, keepdims=True)  # (1,1)


def _vae_loss_kernel(x_ref, eps_ref, embed_ref,
                     w1_ref, w2_ref, w3_ref, w4_ref, w5_ref, wh_ref, bias_ref,
                     o_ref, *, latent_dim, n_loc, embed_len, h_dim, total_batch):
    f32 = jnp.float32
    h_half = h_dim // 2

    step = pl.program_id(0)

    @pl.when(step == 0)
    def _init():
        o_ref[...] = jnp.zeros_like(o_ref)

    # ----- unpack bias slab (static lane slices) -----
    bias = bias_ref[...]                       # [1, total_bias]
    off = 0
    b1 = bias[:, off:off + h_dim]; off += h_dim
    b2 = bias[:, off:off + h_half]; off += h_half
    b3 = bias[:, off:off + 2 * latent_dim]; off += 2 * latent_dim
    b4 = bias[:, off:off + h_half]; off += h_half
    b5 = bias[:, off:off + h_dim]; off += h_dim
    bh = bias[:, off:]                         # packed head biases

    x = x_ref[...]                             # [TB, 6]
    tb = x.shape[0]

    # ----- embedding gather as one-hot @ table on the MXU -----
    loc_idx = x[:, 0:1].astype(jnp.int32)
    onehot = (jax.lax.broadcasted_iota(jnp.int32, (tb, n_loc), 1)
              == loc_idx).astype(f32)
    loc_emb = jnp.dot(onehot, embed_ref[...], preferred_element_type=f32)

    # ----- encode (fc1 applied to [loc_emb | x[:,1:]] via split weight rows) -----
    x_rest = x[:, 1:6]
    h1 = _lrelu(jnp.dot(loc_emb, w1_ref[0:embed_len, :], preferred_element_type=f32)
                + jnp.dot(x_rest, w1_ref[embed_len:embed_len + 5, :],
                          preferred_element_type=f32)
                + b1)
    h2 = _lrelu(jnp.dot(h1, w2_ref[...], preferred_element_type=f32) + b2)
    enc = jnp.dot(h2, w3_ref[...], preferred_element_type=f32) + b3

    mu = enc[:, :latent_dim]
    logvar = enc[:, latent_dim:]

    # ----- reparameterize -----
    std = jnp.exp(0.5 * logvar)
    z = mu + eps_ref[...] * std

    # ----- decode -----
    h3 = _lrelu(jnp.dot(z, w4_ref[...], preferred_element_type=f32) + b4)
    h4 = _lrelu(jnp.dot(h3, w5_ref[...], preferred_element_type=f32) + b5)

    # Single packed head matmul: [loc | soc | month | user | battery | weekday]
    heads = jnp.dot(h4, wh_ref[...], preferred_element_type=f32) + bh

    c = 0
    loc_logits = heads[:, c:c + n_loc]; c += n_loc
    soc_out = heads[:, c:c + 3 * SOC_COMP]; c += 3 * SOC_COMP
    mon_out = heads[:, c:c + 3 * MON_COMP]; c += 3 * MON_COMP
    user_logits = heads[:, c:c + 2]; c += 2
    bat_logits = heads[:, c:c + 5]; c += 5
    wd_logits = heads[:, c:c + 7]

    # ----- loss (targets derived from x in-kernel) -----
    ce_sum = (_cross_entropy_sum(loc_logits, x[:, 0:1].astype(jnp.int32))
              + _cross_entropy_sum(user_logits, x[:, 2:3].astype(jnp.int32))
              + _cross_entropy_sum(bat_logits, x[:, 3:4].astype(jnp.int32))
              + _cross_entropy_sum(wd_logits, x[:, 4:5].astype(jnp.int32)))

    soc_sum = _gmm_nll_sum(soc_out, SOC_COMP, x[:, 1:2])
    mon_sum = _gmm_nll_sum(mon_out, MON_COMP, x[:, 5:6])

    kld_terms = 1.0 + logvar - mu * mu - jnp.exp(logvar)
    kld = -0.5 * jnp.sum(jnp.sum(kld_terms, axis=1, keepdims=True),
                         axis=0, keepdims=True)

    inv_b = f32(1.0 / total_batch)
    # loss_discrete is the mean of 4 batch-mean CEs; soc/mon are batch means;
    # KLD is a full sum (matches the PyTorch reference).
    o_ref[...] += (0.25 * ce_sum + soc_sum + mon_sum) * inv_b + kld


def init_params(key, n_loc, h_dim, embed_len, latent_dim):
    """Deterministic synthetic parameters (shapes from Initial_Gen.__init__)."""
    input_dim = embed_len + 5
    shapes = [
        ("embed", (n_loc, embed_len)),
        ("w1", (input_dim, h_dim)), ("b1", (h_dim,)),
        ("w2", (h_dim, h_dim // 2)), ("b2", (h_dim // 2,)),
        ("w3", (h_dim // 2, 2 * latent_dim)), ("b3", (2 * latent_dim,)),
        ("w4", (latent_dim, h_dim // 2)), ("b4", (h_dim // 2,)),
        ("w5", (h_dim // 2, h_dim)), ("b5", (h_dim,)),
        ("wloc", (h_dim, n_loc)), ("bloc", (n_loc,)),
        ("wsoc", (h_dim, SOC_COMP * 3)), ("bsoc", (SOC_COMP * 3,)),
        ("wmon", (h_dim, MON_COMP * 3)), ("bmon", (MON_COMP * 3,)),
        ("wuser", (h_dim, 2)), ("buser", (2,)),
        ("wbat", (h_dim, 5)), ("bbat", (5,)),
        ("wwd", (h_dim, 7)), ("bwd", (7,)),
    ]
    keys = jax.random.split(key, len(shapes))
    params = {}
    for (name, shape), k in zip(shapes, keys):
        params[name] = jax.random.normal(k, shape, jnp.float32) * 0.1
    return params


def pack_params(params):
    """One-time packing: 6 head weights -> one matrix, all biases -> one row."""
    w_heads = jnp.concatenate(
        [params["wloc"], params["wsoc"], params["wmon"],
         params["wuser"], params["wbat"], params["wwd"]], axis=1)
    bias = jnp.concatenate(
        [params["b1"], params["b2"], params["b3"], params["b4"], params["b5"],
         params["bloc"], params["bsoc"], params["bmon"],
         params["buser"], params["bbat"], params["bwd"]]).reshape(1, -1)
    return {
        "embed": params["embed"],
        "w1": params["w1"], "w2": params["w2"], "w3": params["w3"],
        "w4": params["w4"], "w5": params["w5"],
        "w_heads": w_heads, "bias": bias,
    }


def _batch_tile(b, target=256):
    """Largest tile <= target that divides b (and is a multiple of 8 if < b)."""
    if b <= target:
        return b
    t = target
    while t >= 8:
        if b % t == 0:
            return t
        t -= 8
    return b


def initial_gen_loss(x, packed, eps, *, latent_dim, n_loc, h_dim, embed_len,
                     batch_tile=None):
    """Forward pass of Initial_Gen: returns the scalar VAE loss.

    x: [B, 6] float32 with columns (loc_idx, soc, user_idx, battery_idx,
       weekday_idx, month).  eps: [B, latent_dim] (reparameterization noise).
    """
    b = x.shape[0]
    tb = batch_tile if batch_tile is not None else _batch_tile(b)
    assert b % tb == 0 and (tb == b or tb % 8 == 0), "bad batch tile"
    grid = (b // tb,)

    const2 = lambda i: (0, 0)
    in_specs = [
        pl.BlockSpec((tb, 6), lambda i: (i, 0)),            # x (batch-tiled)
        pl.BlockSpec((tb, latent_dim), lambda i: (i, 0)),   # eps (batch-tiled)
        pl.BlockSpec(packed["embed"].shape, const2),
        pl.BlockSpec(packed["w1"].shape, const2),
        pl.BlockSpec(packed["w2"].shape, const2),
        pl.BlockSpec(packed["w3"].shape, const2),
        pl.BlockSpec(packed["w4"].shape, const2),
        pl.BlockSpec(packed["w5"].shape, const2),
        pl.BlockSpec(packed["w_heads"].shape, const2),
        pl.BlockSpec(packed["bias"].shape, const2),
    ]

    out = pl.pallas_call(
        functools.partial(_vae_loss_kernel, latent_dim=latent_dim, n_loc=n_loc,
                          embed_len=embed_len, h_dim=h_dim, total_batch=b),
        out_shape=jax.ShapeDtypeStruct((1, 1), jnp.float32),
        grid=grid,
        in_specs=in_specs,
        out_specs=pl.BlockSpec((1, 1), lambda i: (0, 0)),   # resident accumulator
        compiler_params=pltpu.CompilerParams(
            dimension_semantics=("arbitrary",)),
    )(x, eps, packed["embed"], packed["w1"], packed["w2"], packed["w3"],
      packed["w4"], packed["w5"], packed["w_heads"], packed["bias"])
    return out[0, 0]


if __name__ == "__main__":
    n_loc, h_dim, embed_len, latent_dim, batch = 16, 32, 8, 6, 8

    key = jax.random.PRNGKey(0)
    kp, kx, keps = jax.random.split(key, 3)
    params = init_params(kp, n_loc, h_dim, embed_len, latent_dim)
    packed = pack_params(params)

    k1, k2, k3, k4, k5, k6 = jax.random.split(kx, 6)
    loc = jax.random.randint(k1, (batch,), 0, n_loc).astype(jnp.float32)
    soc = jax.random.uniform(k2, (batch,), jnp.float32)
    user = jax.random.randint(k3, (batch,), 0, 2).astype(jnp.float32)
    bat = jax.random.randint(k4, (batch,), 0, 5).astype(jnp.float32)
    wday = jax.random.randint(k5, (batch,), 0, 7).astype(jnp.float32)
    month = jax.random.uniform(k6, (batch,), jnp.float32)
    x = jnp.stack([loc, soc, user, bat, wday, month], axis=1)      # [B, 6]

    # eps plays the role of torch.randn_like(std) in reparameterize().
    eps = jax.random.normal(keps, (batch, latent_dim), jnp.float32)

    loss = initial_gen_loss(x, packed, eps, latent_dim=latent_dim, n_loc=n_loc,
                            h_dim=h_dim, embed_len=embed_len)
    jax.block_until_ready(loss)
    print("KERNEL_OK")
</pallas_src>

<mosaic_0001>
module attributes {stable_mosaic.version = 11 : i64} {
  func.func @_vae_loss_kernel(%arg0: i32, %arg1: memref<8x6xf32, #tpu.memory_space<vmem>>, %arg2: memref<8x6xf32, #tpu.memory_space<vmem>>, %arg3: memref<16x8xf32, #tpu.memory_space<vmem>>, %arg4: memref<13x32xf32, #tpu.memory_space<vmem>>, %arg5: memref<32x16xf32, #tpu.memory_space<vmem>>, %arg6: memref<16x12xf32, #tpu.memory_space<vmem>>, %arg7: memref<6x16xf32, #tpu.memory_space<vmem>>, %arg8: memref<16x32xf32, #tpu.memory_space<vmem>>, %arg9: memref<32x84xf32, #tpu.memory_space<vmem>>, %arg10: memref<1x192xf32, #tpu.memory_space<vmem>>, %arg11: memref<1x1xf32, #tpu.memory_space<vmem>>) attributes {dimension_semantics = [#tpu.dimension_semantics<arbitrary>], iteration_bounds = array<i64: 1>, scalar_prefetch = 0 : i64, scratch_operands = 0 : i64, tpu.core_type = #tpu.core_type<tc>, window_params = [{transform_indices = @transform_0, window_bounds = array<i64: 8, 6>}, {transform_indices = @transform_1, window_bounds = array<i64: 8, 6>}, {pipeline_mode = #tpu.pipeline_mode<synchronous>, transform_indices = @transform_2, window_bounds = array<i64: 16, 8>}, {pipeline_mode = #tpu.pipeline_mode<synchronous>, transform_indices = @transform_3, window_bounds = array<i64: 13, 32>}, {pipeline_mode = #tpu.pipeline_mode<synchronous>, transform_indices = @transform_4, window_bounds = array<i64: 32, 16>}, {pipeline_mode = #tpu.pipeline_mode<synchronous>, transform_indices = @transform_5, window_bounds = array<i64: 16, 12>}, {pipeline_mode = #tpu.pipeline_mode<synchronous>, transform_indices = @transform_6, window_bounds = array<i64: 6, 16>}, {pipeline_mode = #tpu.pipeline_mode<synchronous>, transform_indices = @transform_7, window_bounds = array<i64: 16, 32>}, {pipeline_mode = #tpu.pipeline_mode<synchronous>, transform_indices = @transform_8, window_bounds = array<i64: 32, 84>}, {pipeline_mode = #tpu.pipeline_mode<synchronous>, transform_indices = @transform_9, window_bounds = array<i64: 1, 192>}, {pipeline_mode = #tpu.pipeline_mode<synchronous>, transform_indices = @transform_10, window_bounds = array<i64: 1, 1>}]} {
    %c0_i32 = arith.constant 0 : i32
    %0 = arith.cmpi eq, %arg0, %c0_i32 : i32
    %1 = arith.extui %0 : i1 to i32
    %c0_i32_0 = arith.constant 0 : i32
    %2 = arith.cmpi ne, %1, %c0_i32_0 : i32
    scf.if %2 {
      %cst_83 = arith.constant 0.000000e+00 : f32
      %281 = vector.broadcast %cst_83 : f32 to vector<1x1xf32>
      %c0_84 = arith.constant 0 : index
      %c0_85 = arith.constant 0 : index
      %282 = vector.load %arg11[%c0_84, %c0_85] : memref<1x1xf32, #tpu.memory_space<vmem>>, vector<1x1xf32>
      tpu.vector_store %arg11[%c0_84, %c0_85], %281 {strides = array<i32>} : memref<1x1xf32, #tpu.memory_space<vmem>>, vector<1x1xf32>,
    } else {
    }
    %c0 = arith.constant 0 : index
    %c0_1 = arith.constant 0 : index
    %3 = vector.load %arg10[%c0, %c0_1] : memref<1x192xf32, #tpu.memory_space<vmem>>, vector<1x192xf32>
    %4 = vector.extract_strided_slice %3 {offsets = [0, 0], sizes = [1, 32], strides = [1, 1]} : vector<1x192xf32> to vector<1x32xf32>
    %5 = vector.extract_strided_slice %3 {offsets = [0, 32], sizes = [1, 16], strides = [1, 1]} : vector<1x192xf32> to vector<1x16xf32>
    %6 = vector.extract_strided_slice %3 {offsets = [0, 48], sizes = [1, 12], strides = [1, 1]} : vector<1x192xf32> to vector<1x12xf32>
    %7 = vector.extract_strided_slice %3 {offsets = [0, 60], sizes = [1, 16], strides = [1, 1]} : vector<1x192xf32> to vector<1x16xf32>
    %8 = vector.extract_strided_slice %3 {offsets = [0, 76], sizes = [1, 32], strides = [1, 1]} : vector<1x192xf32> to vector<1x32xf32>
    %9 = vector.extract_strided_slice %3 {offsets = [0, 108], sizes = [1, 84], strides = [1, 1]} : vector<1x192xf32> to vector<1x84xf32>
    %c0_2 = arith.constant 0 : index
    %c0_3 = arith.constant 0 : index
    %10 = vector.load %arg1[%c0_2, %c0_3] : memref<8x6xf32, #tpu.memory_space<vmem>>, vector<8x6xf32>
    %11 = vector.extract_strided_slice %10 {offsets = [0, 0], sizes = [8, 1], strides = [1, 1]} : vector<8x6xf32> to vector<8x1xf32>
    %12 = arith.fptosi %11 : vector<8x1xf32> to vector<8x1xi32>
    %13 = tpu.iota {dimensions = array<i32: 1>} : vector<8x16xi32>
    %14 = vector.broadcast %12 : vector<8x1xi32> to vector<8x16xi32>
    %15 = arith.cmpi eq, %13, %14 : vector<8x16xi32>
    %16 = arith.extui %15 : vector<8x16xi1> to vector<8x16xi32>
    %17 = arith.sitofp %16 : vector<8x16xi32> to vector<8x16xf32>
    %c0_4 = arith.constant 0 : index
    %c0_5 = arith.constant 0 : index
    %18 = vector.load %arg3[%c0_4, %c0_5] : memref<16x8xf32, #tpu.memory_space<vmem>>, vector<16x8xf32>
    %cst = arith.constant dense<0.000000e+00> : vector<8x8xf32>
    %19 = tpu.matmul %17, %18, %cst {dimension_numbers = #tpu.dot_dimension_numbers<[1], [0], [0], [1], [0, 0, 1, 1], [], []>} : vector<8x16xf32>, vector<16x8xf32>, vector<8x8xf32> -> vector<8x8xf32>
    %20 = vector.extract_strided_slice %10 {offsets = [0, 1], sizes = [8, 5], strides = [1, 1]} : vector<8x6xf32> to vector<8x5xf32>
    %c0_6 = arith.constant 0 : index
    %c0_7 = arith.constant 0 : index
    %21 = vector.load %arg4[%c0_6, %c0_7] : memref<13x32xf32, #tpu.memory_space<vmem>>, vector<8x32xf32>
    %cst_8 = arith.constant dense<0.000000e+00> : vector<8x32xf32>
    %22 = tpu.matmul %19, %21, %cst_8 {dimension_numbers = #tpu.dot_dimension_numbers<[1], [0], [0], [1], [0, 0, 1, 1], [], []>} : vector<8x8xf32>, vector<8x32xf32>, vector<8x32xf32> -> vector<8x32xf32>
    %c8 = arith.constant 8 : index
    %c0_9 = arith.constant 0 : index
    %23 = vector.load %arg4[%c8, %c0_9] : memref<13x32xf32, #tpu.memory_space<vmem>>, vector<5x32xf32>
    %cst_10 = arith.constant dense<0.000000e+00> : vector<8x32xf32>
    %24 = tpu.matmul %20, %23, %cst_10 {dimension_numbers = #tpu.dot_dimension_numbers<[1], [0], [0], [1], [0, 0, 1, 1], [], []>} : vector<8x5xf32>, vector<5x32xf32>, vector<8x32xf32> -> vector<8x32xf32>
    %25 = arith.addf %22, %24 : vector<8x32xf32>
    %26 = vector.broadcast %4 : vector<1x32xf32> to vector<8x32xf32>
    %27 = arith.addf %25, %26 : vector<8x32xf32>
    %cst_11 = arith.constant 0.000000e+00 : f32
    %28 = vector.broadcast %cst_11 : f32 to vector<8x32xf32>
    %29 = arith.cmpf oge, %27, %28 : vector<8x32xf32>
    %cst_12 = arith.constant 0.00999999977 : f32
    %30 = vector.broadcast %cst_12 : f32 to vector<8x32xf32>
    %31 = arith.mulf %30, %27 : vector<8x32xf32>
    %32 = arith.select %29, %27, %31 : vector<8x32xi1>, vector<8x32xf32>
    %c0_13 = arith.constant 0 : index
    %c0_14 = arith.constant 0 : index
    %33 = vector.load %arg5[%c0_13, %c0_14] : memref<32x16xf32, #tpu.memory_space<vmem>>, vector<32x16xf32>
    %cst_15 = arith.constant dense<0.000000e+00> : vector<8x16xf32>
    %34 = tpu.matmul %32, %33, %cst_15 {dimension_numbers = #tpu.dot_dimension_numbers<[1], [0], [0], [1], [0, 0, 1, 1], [], []>} : vector<8x32xf32>, vector<32x16xf32>, vector<8x16xf32> -> vector<8x16xf32>
    %35 = vector.broadcast %5 : vector<1x16xf32> to vector<8x16xf32>
    %36 = arith.addf %34, %35 : vector<8x16xf32>
    %cst_16 = arith.constant 0.000000e+00 : f32
    %37 = vector.broadcast %cst_16 : f32 to vector<8x16xf32>
    %38 = arith.cmpf oge, %36, %37 : vector<8x16xf32>
    %cst_17 = arith.constant 0.00999999977 : f32
    %39 = vector.broadcast %cst_17 : f32 to vector<8x16xf32>
    %40 = arith.mulf %39, %36 : vector<8x16xf32>
    %41 = arith.select %38, %36, %40 : vector<8x16xi1>, vector<8x16xf32>
    %c0_18 = arith.constant 0 : index
    %c0_19 = arith.constant 0 : index
    %42 = vector.load %arg6[%c0_18, %c0_19] : memref<16x12xf32, #tpu.memory_space<vmem>>, vector<16x12xf32>
    %cst_20 = arith.constant dense<0.000000e+00> : vector<8x12xf32>
    %43 = tpu.matmul %41, %42, %cst_20 {dimension_numbers = #tpu.dot_dimension_numbers<[1], [0], [0], [1], [0, 0, 1, 1], [], []>} : vector<8x16xf32>, vector<16x12xf32>, vector<8x12xf32> -> vector<8x12xf32>
    %44 = vector.broadcast %6 : vector<1x12xf32> to vector<8x12xf32>
    %45 = arith.addf %43, %44 : vector<8x12xf32>
    %46 = vector.extract_strided_slice %45 {offsets = [0, 0], sizes = [8, 6], strides = [1, 1]} : vector<8x12xf32> to vector<8x6xf32>
    %47 = vector.extract_strided_slice %45 {offsets = [0, 6], sizes = [8, 6], strides = [1, 1]} : vector<8x12xf32> to vector<8x6xf32>
    %cst_21 = arith.constant 5.000000e-01 : f32
    %48 = vector.broadcast %cst_21 : f32 to vector<8x6xf32>
    %49 = arith.mulf %48, %47 : vector<8x6xf32>
    %50 = math.exp %49 : vector<8x6xf32>
    %c0_22 = arith.constant 0 : index
    %c0_23 = arith.constant 0 : index
    %51 = vector.load %arg2[%c0_22, %c0_23] : memref<8x6xf32, #tpu.memory_space<vmem>>, vector<8x6xf32>
    %52 = arith.mulf %51, %50 : vector<8x6xf32>
    %53 = arith.addf %46, %52 : vector<8x6xf32>
    %c0_24 = arith.constant 0 : index
    %c0_25 = arith.constant 0 : index
    %54 = vector.load %arg7[%c0_24, %c0_25] : memref<6x16xf32, #tpu.memory_space<vmem>>, vector<6x16xf32>
    %cst_26 = arith.constant dense<0.000000e+00> : vector<8x16xf32>
    %55 = tpu.matmul %53, %54, %cst_26 {dimension_numbers = #tpu.dot_dimension_numbers<[1], [0], [0], [1], [0, 0, 1, 1], [], []>} : vector<8x6xf32>, vector<6x16xf32>, vector<8x16xf32> -> vector<8x16xf32>
    %56 = vector.broadcast %7 : vector<1x16xf32> to vector<8x16xf32>
    %57 = arith.addf %55, %56 : vector<8x16xf32>
    %cst_27 = arith.constant 0.000000e+00 : f32
    %58 = vector.broadcast %cst_27 : f32 to vector<8x16xf32>
    %59 = arith.cmpf oge, %57, %58 : vector<8x16xf32>
    %cst_28 = arith.constant 0.00999999977 : f32
    %60 = vector.broadcast %cst_28 : f32 to vector<8x16xf32>
    %61 = arith.mulf %60, %57 : vector<8x16xf32>
    %62 = arith.select %59, %57, %61 : vector<8x16xi1>, vector<8x16xf32>
    %c0_29 = arith.constant 0 : index
    %c0_30 = arith.constant 0 : index
    %63 = vector.load %arg8[%c0_29, %c0_30] : memref<16x32xf32, #tpu.memory_space<vmem>>, vector<16x32xf32>
    %cst_31 = arith.constant dense<0.000000e+00> : vector<8x32xf32>
    %64 = tpu.matmul %62, %63, %cst_31 {dimension_numbers = #tpu.dot_dimension_numbers<[1], [0], [0], [1], [0, 0, 1, 1], [], []>} : vector<8x16xf32>, vector<16x32xf32>, vector<8x32xf32> -> vector<8x32xf32>
    %65 = vector.broadcast %8 : vector<1x32xf32> to vector<8x32xf32>
    %66 = arith.addf %64, %65 : vector<8x32xf32>
    %cst_32 = arith.constant 0.000000e+00 : f32
    %67 = vector.broadcast %cst_32 : f32 to vector<8x32xf32>
    %68 = arith.cmpf oge, %66, %67 : vector<8x32xf32>
    %cst_33 = arith.constant 0.00999999977 : f32
    %69 = vector.broadcast %cst_33 : f32 to vector<8x32xf32>
    %70 = arith.mulf %69, %66 : vector<8x32xf32>
    %71 = arith.select %68, %66, %70 : vector<8x32xi1>, vector<8x32xf32>
    %c0_34 = arith.constant 0 : index
    %c0_35 = arith.constant 0 : index
    %72 = vector.load %arg9[%c0_34, %c0_35] : memref<32x84xf32, #tpu.memory_space<vmem>>, vector<32x84xf32>
    %cst_36 = arith.constant dense<0.000000e+00> : vector<8x84xf32>
    %73 = tpu.matmul %71, %72, %cst_36 {dimension_numbers = #tpu.dot_dimension_numbers<[1], [0], [0], [1], [0, 0, 1, 1], [], []>} : vector<8x32xf32>, vector<32x84xf32>, vector<8x84xf32> -> vector<8x84xf32>
    %74 = vector.broadcast %9 : vector<1x84xf32> to vector<8x84xf32>
    %75 = arith.addf %73, %74 : vector<8x84xf32>
    %76 = vector.extract_strided_slice %75 {offsets = [0, 0], sizes = [8, 16], strides = [1, 1]} : vector<8x84xf32> to vector<8x16xf32>
    %77 = vector.extract_strided_slice %75 {offsets = [0, 16], sizes = [8, 18], strides = [1, 1]} : vector<8x84xf32> to vector<8x18xf32>
    %78 = vector.extract_strided_slice %75 {offsets = [0, 34], sizes = [8, 36], strides = [1, 1]} : vector<8x84xf32> to vector<8x36xf32>
    %79 = vector.extract_strided_slice %75 {offsets = [0, 70], sizes = [8, 2], strides = [1, 1]} : vector<8x84xf32> to vector<8x2xf32>
    %80 = vector.extract_strided_slice %75 {offsets = [0, 72], sizes = [8, 5], strides = [1, 1]} : vector<8x84xf32> to vector<8x5xf32>
    %81 = vector.extract_strided_slice %75 {offsets = [0, 77], sizes = [8, 7], strides = [1, 1]} : vector<8x84xf32> to vector<8x7xf32>
    %82 = vector.extract_strided_slice %10 {offsets = [0, 0], sizes = [8, 1], strides = [1, 1]} : vector<8x6xf32> to vector<8x1xf32>
    %83 = arith.fptosi %82 : vector<8x1xf32> to vector<8x1xi32>
    %cst_37 = arith.constant dense<0xFF800000> : vector<8xf32>
    %84 = vector.multi_reduction <maximumf>, %76, %cst_37 [1] : vector<8x16xf32> to vector<8xf32>
    %85 = vector.shape_cast %84 : vector<8xf32> to vector<8x1xf32>
    %86 = vector.broadcast %85 : vector<8x1xf32> to vector<8x16xf32>
    %87 = arith.subf %76, %86 : vector<8x16xf32>
    %88 = math.exp %87 : vector<8x16xf32>
    %cst_38 = arith.constant dense<0.000000e+00> : vector<8xf32>
    %89 = vector.multi_reduction <add>, %88, %cst_38 [1] : vector<8x16xf32> to vector<8xf32>
    %90 = vector.shape_cast %89 : vector<8xf32> to vector<8x1xf32>
    %91 = math.log %90 : vector<8x1xf32>
    %92 = arith.addf %85, %91 : vector<8x1xf32>
    %93 = tpu.iota {dimensions = array<i32: 1>} : vector<8x16xi32>
    %94 = vector.broadcast %83 : vector<8x1xi32> to vector<8x16xi32>
    %95 = arith.cmpi eq, %93, %94 : vector<8x16xi32>
    %96 = arith.extui %95 : vector<8x16xi1> to vector<8x16xi32>
    %97 = arith.sitofp %96 : vector<8x16xi32> to vector<8x16xf32>
    %98 = arith.mulf %76, %97 : vector<8x16xf32>
    %cst_39 = arith.constant dense<0.000000e+00> : vector<8xf32>
    %99 = vector.multi_reduction <add>, %98, %cst_39 [1] : vector<8x16xf32> to vector<8xf32>
    %100 = vector.shape_cast %99 : vector<8xf32> to vector<8x1xf32>
    %101 = arith.subf %92, %100 : vector<8x1xf32>
    %cst_40 = arith.constant dense<0.000000e+00> : vector<1xf32>
    %102 = vector.multi_reduction <add>, %101, %cst_40 [0] : vector<8x1xf32> to vector<1xf32>
    %103 = vector.shape_cast %102 : vector<1xf32> to vector<1x1xf32>
    %104 = vector.extract_strided_slice %10 {offsets = [0, 2], sizes = [8, 1], strides = [1, 1]} : vector<8x6xf32> to vector<8x1xf32>
    %105 = arith.fptosi %104 : vector<8x1xf32> to vector<8x1xi32>
    %cst_41 = arith.constant dense<0xFF800000> : vector<8xf32>
    %106 = vector.multi_reduction <maximumf>, %79, %cst_41 [1] : vector<8x2xf32> to vector<8xf32>
    %107 = vector.shape_cast %106 : vector<8xf32> to vector<8x1xf32>
    %108 = vector.broadcast %107 : vector<8x1xf32> to vector<8x2xf32>
    %109 = arith.subf %79, %108 : vector<8x2xf32>
    %110 = math.exp %109 : vector<8x2xf32>
    %cst_42 = arith.constant dense<0.000000e+00> : vector<8xf32>
    %111 = vector.multi_reduction <add>, %110, %cst_42 [1] : vector<8x2xf32> to vector<8xf32>
    %112 = vector.shape_cast %111 : vector<8xf32> to vector<8x1xf32>
    %113 = math.log %112 : vector<8x1xf32>
    %114 = arith.addf %107, %113 : vector<8x1xf32>
    %115 = tpu.iota {dimensions = array<i32: 1>} : vector<8x2xi32>
    %116 = vector.broadcast %105 : vector<8x1xi32> to vector<8x2xi32>
    %117 = arith.cmpi eq, %115, %116 : vector<8x2xi32>
    %118 = arith.extui %117 : vector<8x2xi1> to vector<8x2xi32>
    %119 = arith.sitofp %118 : vector<8x2xi32> to vector<8x2xf32>
    %120 = arith.mulf %79, %119 : vector<8x2xf32>
    %cst_43 = arith.constant dense<0.000000e+00> : vector<8xf32>
    %121 = vector.multi_reduction <add>, %120, %cst_43 [1] : vector<8x2xf32> to vector<8xf32>
    %122 = vector.shape_cast %121 : vector<8xf32> to vector<8x1xf32>
    %123 = arith.subf %114, %122 : vector<8x1xf32>
    %cst_44 = arith.constant dense<0.000000e+00> : vector<1xf32>
    %124 = vector.multi_reduction <add>, %123, %cst_44 [0] : vector<8x1xf32> to vector<1xf32>
    %125 = vector.shape_cast %124 : vector<1xf32> to vector<1x1xf32>
    %126 = arith.addf %103, %125 : vector<1x1xf32>
    %127 = vector.extract_strided_slice %10 {offsets = [0, 3], sizes = [8, 1], strides = [1, 1]} : vector<8x6xf32> to vector<8x1xf32>
    %128 = arith.fptosi %127 : vector<8x1xf32> to vector<8x1xi32>
    %cst_45 = arith.constant dense<0xFF800000> : vector<8xf32>
    %129 = vector.multi_reduction <maximumf>, %80, %cst_45 [1] : vector<8x5xf32> to vector<8xf32>
    %130 = vector.shape_cast %129 : vector<8xf32> to vector<8x1xf32>
    %131 = vector.broadcast %130 : vector<8x1xf32> to vector<8x5xf32>
    %132 = arith.subf %80, %131 : vector<8x5xf32>
    %133 = math.exp %132 : vector<8x5xf32>
    %cst_46 = arith.constant dense<0.000000e+00> : vector<8xf32>
    %134 = vector.multi_reduction <add>, %133, %cst_46 [1] : vector<8x5xf32> to vector<8xf32>
    %135 = vector.shape_cast %134 : vector<8xf32> to vector<8x1xf32>
    %136 = math.log %135 : vector<8x1xf32>
    %137 = arith.addf %130, %136 : vector<8x1xf32>
    %138 = tpu.iota {dimensions = array<i32: 1>} : vector<8x5xi32>
    %139 = vector.broadcast %128 : vector<8x1xi32> to vector<8x5xi32>
    %140 = arith.cmpi eq, %138, %139 : vector<8x5xi32>
    %141 = arith.extui %140 : vector<8x5xi1> to vector<8x5xi32>
    %142 = arith.sitofp %141 : vector<8x5xi32> to vector<8x5xf32>
    %143 = arith.mulf %80, %142 : vector<8x5xf32>
    %cst_47 = arith.constant dense<0.000000e+00> : vector<8xf32>
    %144 = vector.multi_reduction <add>, %143, %cst_47 [1] : vector<8x5xf32> to vector<8xf32>
    %145 = vector.shape_cast %144 : vector<8xf32> to vector<8x1xf32>
    %146 = arith.subf %137, %145 : vector<8x1xf32>
    %cst_48 = arith.constant dense<0.000000e+00> : vector<1xf32>
    %147 = vector.multi_reduction <add>, %146, %cst_48 [0] : vector<8x1xf32> to vector<1xf32>
    %148 = vector.shape_cast %147 : vector<1xf32> to vector<1x1xf32>
    %149 = arith.addf %126, %148 : vector<1x1xf32>
    %150 = vector.extract_strided_slice %10 {offsets = [0, 4], sizes = [8, 1], strides = [1, 1]} : vector<8x6xf32> to vector<8x1xf32>
    %151 = arith.fptosi %150 : vector<8x1xf32> to vector<8x1xi32>
    %cst_49 = arith.constant dense<0xFF800000> : vector<8xf32>
    %152 = vector.multi_reduction <maximumf>, %81, %cst_49 [1] : vector<8x7xf32> to vector<8xf32>
    %153 = vector.shape_cast %152 : vector<8xf32> to vector<8x1xf32>
    %154 = vector.broadcast %153 : vector<8x1xf32> to vector<8x7xf32>
    %155 = arith.subf %81, %154 : vector<8x7xf32>
    %156 = math.exp %155 : vector<8x7xf32>
    %cst_50 = arith.constant dense<0.000000e+00> : vector<8xf32>
    %157 = vector.multi_reduction <add>, %156, %cst_50 [1] : vector<8x7xf32> to vector<8xf32>
    %158 = vector.shape_cast %157 : vector<8xf32> to vector<8x1xf32>
    %159 = math.log %158 : vector<8x1xf32>
    %160 = arith.addf %153, %159 : vector<8x1xf32>
    %161 = tpu.iota {dimensions = array<i32: 1>} : vector<8x7xi32>
    %162 = vector.broadcast %151 : vector<8x1xi32> to vector<8x7xi32>
    %163 = arith.cmpi eq, %161, %162 : vector<8x7xi32>
    %164 = arith.extui %163 : vector<8x7xi1> to vector<8x7xi32>
    %165 = arith.sitofp %164 : vector<8x7xi32> to vector<8x7xf32>
    %166 = arith.mulf %81, %165 : vector<8x7xf32>
    %cst_51 = arith.constant dense<0.000000e+00> : vector<8xf32>
    %167 = vector.multi_reduction <add>, %166, %cst_51 [1] : vector<8x7xf32> to vector<8xf32>
    %168 = vector.shape_cast %167 : vector<8xf32> to vector<8x1xf32>
    %169 = arith.subf %160, %168 : vector<8x1xf32>
    %cst_52 = arith.constant dense<0.000000e+00> : vector<1xf32>
    %170 = vector.multi_reduction <add>, %169, %cst_52 [0] : vector<8x1xf32> to vector<1xf32>
    %171 = vector.shape_cast %170 : vector<1xf32> to vector<1x1xf32>
    %172 = arith.addf %149, %171 : vector<1x1xf32>
    %173 = vector.extract_strided_slice %10 {offsets = [0, 1], sizes = [8, 1], strides = [1, 1]} : vector<8x6xf32> to vector<8x1xf32>
    %174 = vector.extract_strided_slice %77 {offsets = [0, 0], sizes = [8, 6], strides = [1, 1]} : vector<8x18xf32> to vector<8x6xf32>
    %175 = vector.extract_strided_slice %77 {offsets = [0, 6], sizes = [8, 6], strides = [1, 1]} : vector<8x18xf32> to vector<8x6xf32>
    %cst_53 = arith.constant 5.000000e-01 : f32
    %176 = vector.broadcast %cst_53 : f32 to vector<8x6xf32>
    %177 = arith.mulf %176, %175 : vector<8x6xf32>
    %cst_54 = arith.constant 0.000000e+00 : f32
    %178 = vector.broadcast %cst_54 : f32 to vector<8x6xf32>
    %179 = arith.subf %178, %177 : vector<8x6xf32>
    %180 = math.exp %179 : vector<8x6xf32>
    %181 = vector.extract_strided_slice %77 {offsets = [0, 12], sizes = [8, 6], strides = [1, 1]} : vector<8x18xf32> to vector<8x6xf32>
    %cst_55 = arith.constant dense<0xFF800000> : vector<8xf32>
    %182 = vector.multi_reduction <maximumf>, %181, %cst_55 [1] : vector<8x6xf32> to vector<8xf32>
    %183 = vector.shape_cast %182 : vector<8xf32> to vector<8x1xf32>
    %184 = vector.broadcast %183 : vector<8x1xf32> to vector<8x6xf32>
    %185 = arith.subf %181, %184 : vector<8x6xf32>
    %186 = math.exp %185 : vector<8x6xf32>
    %cst_56 = arith.constant dense<0.000000e+00> : vector<8xf32>
    %187 = vector.multi_reduction <add>, %186, %cst_56 [1] : vector<8x6xf32> to vector<8xf32>
    %188 = vector.shape_cast %187 : vector<8xf32> to vector<8x1xf32>
    %189 = math.log %188 : vector<8x1xf32>
    %190 = arith.addf %183, %189 : vector<8x1xf32>
    %191 = vector.broadcast %190 : vector<8x1xf32> to vector<8x6xf32>
    %192 = arith.subf %181, %191 : vector<8x6xf32>
    %193 = vector.broadcast %173 : vector<8x1xf32> to vector<8x6xf32>
    %194 = arith.subf %193, %174 : vector<8x6xf32>
    %195 = arith.mulf %194, %180 : vector<8x6xf32>
    %196 = arith.mulf %195, %195 : vector<8x6xf32>
    %cst_57 = arith.constant -5.000000e-01 : f32
    %197 = vector.broadcast %cst_57 : f32 to vector<8x6xf32>
    %198 = arith.mulf %197, %196 : vector<8x6xf32>
    %199 = arith.subf %198, %177 : vector<8x6xf32>
    %cst_58 = arith.constant 0.918938517 : f32
    %200 = vector.broadcast %cst_58 : f32 to vector<8x6xf32>
    %201 = arith.subf %199, %200 : vector<8x6xf32>
    %202 = arith.addf %192, %201 : vector<8x6xf32>
    %cst_59 = arith.constant dense<0xFF800000> : vector<8xf32>
    %203 = vector.multi_reduction <maximumf>, %202, %cst_59 [1] : vector<8x6xf32> to vector<8xf32>
    %204 = vector.shape_cast %203 : vector<8xf32> to vector<8x1xf32>
    %205 = vector.broadcast %204 : vector<8x1xf32> to vector<8x6xf32>
    %206 = arith.subf %202, %205 : vector<8x6xf32>
    %207 = math.exp %206 : vector<8x6xf32>
    %cst_60 = arith.constant dense<0.000000e+00> : vector<8xf32>
    %208 = vector.multi_reduction <add>, %207, %cst_60 [1] : vector<8x6xf32> to vector<8xf32>
    %209 = vector.shape_cast %208 : vector<8xf32> to vector<8x1xf32>
    %210 = math.log %209 : vector<8x1xf32>
    %211 = arith.addf %204, %210 : vector<8x1xf32>
    %cst_61 = arith.constant dense<0.000000e+00> : vector<1xf32>
    %212 = vector.multi_reduction <add>, %211, %cst_61 [0] : vector<8x1xf32> to vector<1xf32>
    %213 = vector.shape_cast %212 : vector<1xf32> to vector<1x1xf32>
    %cst_62 = arith.constant 0.000000e+00 : f32
    %214 = vector.broadcast %cst_62 : f32 to vector<1x1xf32>
    %215 = arith.subf %214, %213 : vector<1x1xf32>
    %216 = vector.extract_strided_slice %10 {offsets = [0, 5], sizes = [8, 1], strides = [1, 1]} : vector<8x6xf32> to vector<8x1xf32>
    %217 = vector.extract_strided_slice %78 {offsets = [0, 0], sizes = [8, 12], strides = [1, 1]} : vector<8x36xf32> to vector<8x12xf32>
    %218 = vector.extract_strided_slice %78 {offsets = [0, 12], sizes = [8, 12], strides = [1, 1]} : vector<8x36xf32> to vector<8x12xf32>
    %cst_63 = arith.constant 5.000000e-01 : f32
    %219 = vector.broadcast %cst_63 : f32 to vector<8x12xf32>
    %220 = arith.mulf %219, %218 : vector<8x12xf32>
    %cst_64 = arith.constant 0.000000e+00 : f32
    %221 = vector.broadcast %cst_64 : f32 to vector<8x12xf32>
    %222 = arith.subf %221, %220 : vector<8x12xf32>
    %223 = math.exp %222 : vector<8x12xf32>
    %224 = vector.extract_strided_slice %78 {offsets = [0, 24], sizes = [8, 12], strides = [1, 1]} : vector<8x36xf32> to vector<8x12xf32>
    %cst_65 = arith.constant dense<0xFF800000> : vector<8xf32>
    %225 = vector.multi_reduction <maximumf>, %224, %cst_65 [1] : vector<8x12xf32> to vector<8xf32>
    %226 = vector.shape_cast %225 : vector<8xf32> to vector<8x1xf32>
    %227 = vector.broadcast %226 : vector<8x1xf32> to vector<8x12xf32>
    %228 = arith.subf %224, %227 : vector<8x12xf32>
    %229 = math.exp %228 : vector<8x12xf32>
    %cst_66 = arith.constant dense<0.000000e+00> : vector<8xf32>
    %230 = vector.multi_reduction <add>, %229, %cst_66 [1] : vector<8x12xf32> to vector<8xf32>
    %231 = vector.shape_cast %230 : vector<8xf32> to vector<8x1xf32>
    %232 = math.log %231 : vector<8x1xf32>
    %233 = arith.addf %226, %232 : vector<8x1xf32>
    %234 = vector.broadcast %233 : vector<8x1xf32> to vector<8x12xf32>
    %235 = arith.subf %224, %234 : vector<8x12xf32>
    %236 = vector.broadcast %216 : vector<8x1xf32> to vector<8x12xf32>
    %237 = arith.subf %236, %217 : vector<8x12xf32>
    %238 = arith.mulf %237, %223 : vector<8x12xf32>
    %239 = arith.mulf %238, %238 : vector<8x12xf32>
    %cst_67 = arith.constant -5.000000e-01 : f32
    %240 = vector.broadcast %cst_67 : f32 to vector<8x12xf32>
    %241 = arith.mulf %240, %239 : vector<8x12xf32>
    %242 = arith.subf %241, %220 : vector<8x12xf32>
    %cst_68 = arith.constant 0.918938517 : f32
    %243 = vector.broadcast %cst_68 : f32 to vector<8x12xf32>
    %244 = arith.subf %242, %243 : vector<8x12xf32>
    %245 = arith.addf %235, %244 : vector<8x12xf32>
    %cst_69 = arith.constant dense<0xFF800000> : vector<8xf32>
    %246 = vector.multi_reduction <maximumf>, %245, %cst_69 [1] : vector<8x12xf32> to vector<8xf32>
    %247 = vector.shape_cast %246 : vector<8xf32> to vector<8x1xf32>
    %248 = vector.broadcast %247 : vector<8x1xf32> to vector<8x12xf32>
    %249 = arith.subf %245, %248 : vector<8x12xf32>
    %250 = math.exp %249 : vector<8x12xf32>
    %cst_70 = arith.constant dense<0.000000e+00> : vector<8xf32>
    %251 = vector.multi_reduction <add>, %250, %cst_70 [1] : vector<8x12xf32> to vector<8xf32>
    %252 = vector.shape_cast %251 : vector<8xf32> to vector<8x1xf32>
    %253 = math.log %252 : vector<8x1xf32>
    %254 = arith.addf %247, %253 : vector<8x1xf32>
    %cst_71 = arith.constant dense<0.000000e+00> : vector<1xf32>
    %255 = vector.multi_reduction <add>, %254, %cst_71 [0] : vector<8x1xf32> to vector<1xf32>
    %256 = vector.shape_cast %255 : vector<1xf32> to vector<1x1xf32>
    %cst_72 = arith.constant 0.000000e+00 : f32
    %257 = vector.broadcast %cst_72 : f32 to vector<1x1xf32>
    %258 = arith.subf %257, %256 : vector<1x1xf32>
    %cst_73 = arith.constant 1.000000e+00 : f32
    %259 = vector.broadcast %cst_73 : f32 to vector<8x6xf32>
    %260 = arith.addf %259, %47 : vector<8x6xf32>
    %261 = arith.mulf %46, %46 : vector<8x6xf32>
    %262 = arith.subf %260, %261 : vector<8x6xf32>
    %263 = math.exp %47 : vector<8x6xf32>
    %264 = arith.subf %262, %263 : vector<8x6xf32>
    %cst_74 = arith.constant dense<0.000000e+00> : vector<8xf32>
    %265 = vector.multi_reduction <add>, %264, %cst_74 [1] : vector<8x6xf32> to vector<8xf32>
    %266 = vector.shape_cast %265 : vector<8xf32> to vector<8x1xf32>
    %cst_75 = arith.constant dense<0.000000e+00> : vector<1xf32>
    %267 = vector.multi_reduction <add>, %266, %cst_75 [0] : vector<8x1xf32> to vector<1xf32>
    %268 = vector.shape_cast %267 : vector<1xf32> to vector<1x1xf32>
    %cst_76 = arith.constant -5.000000e-01 : f32
    %269 = vector.broadcast %cst_76 : f32 to vector<1x1xf32>
    %270 = arith.mulf %269, %268 : vector<1x1xf32>
    %c0_77 = arith.constant 0 : index
    %c0_78 = arith.constant 0 : index
    %271 = vector.load %arg11[%c0_77, %c0_78] : memref<1x1xf32, #tpu.memory_space<vmem>>, vector<1x1xf32>
    %cst_79 = arith.constant 2.500000e-01 : f32
    %272 = vector.broadcast %cst_79 : f32 to vector<1x1xf32>
    %273 = arith.mulf %272, %172 : vector<1x1xf32>
    %274 = arith.addf %273, %215 : vector<1x1xf32>
    %275 = arith.addf %274, %258 : vector<1x1xf32>
    %cst_80 = arith.constant 1.250000e-01 : f32
    %276 = vector.broadcast %cst_80 : f32 to vector<1x1xf32>
    %277 = arith.mulf %275, %276 : vector<1x1xf32>
    %278 = arith.addf %277, %270 : vector<1x1xf32>
    %279 = arith.addf %271, %278 : vector<1x1xf32>
    %c0_81 = arith.constant 0 : index
    %c0_82 = arith.constant 0 : index
    %280 = vector.load %arg11[%c0_81, %c0_82] : memref<1x1xf32, #tpu.memory_space<vmem>>, vector<1x1xf32>
    tpu.vector_store %arg11[%c0_81, %c0_82], %279 {strides = array<i32>} : memref<1x1xf32, #tpu.memory_space<vmem>>, vector<1x1xf32>,
    return
  }
  func.func @transform_0(%arg0: i32) -> (i32, i32) {
    %c0_i32 = arith.constant 0 : i32
    %c0_i32_0 = arith.constant 0 : i32
    return %arg0, %c0_i32 : i32, i32
  }
  func.func @transform_1(%arg0: i32) -> (i32, i32) {
    %c0_i32 = arith.constant 0 : i32
    %c0_i32_0 = arith.constant 0 : i32
    return %arg0, %c0_i32 : i32, i32
  }
  func.func @transform_2(%arg0: i32) -> (i32, i32) {
    %c0_i32 = arith.constant 0 : i32
    %c0_i32_0 = arith.constant 0 : i32
    %c0_i32_1 = arith.constant 0 : i32
    return %c0_i32, %c0_i32_0 : i32, i32
  }
  func.func @transform_3(%arg0: i32) -> (i32, i32) {
    %c0_i32 = arith.constant 0 : i32
    %c0_i32_0 = arith.constant 0 : i32
    %c0_i32_1 = arith.constant 0 : i32
    return %c0_i32, %c0_i32_0 : i32, i32
  }
  func.func @transform_4(%arg0: i32) -> (i32, i32) {
    %c0_i32 = arith.constant 0 : i32
    %c0_i32_0 = arith.constant 0 : i32
    %c0_i32_1 = arith.constant 0 : i32
    return %c0_i32, %c0_i32_0 : i32, i32
  }
  func.func @transform_5(%arg0: i32) -> (i32, i32) {
    %c0_i32 = arith.constant 0 : i32
    %c0_i32_0 = arith.constant 0 : i32
    %c0_i32_1 = arith.constant 0 : i32
    return %c0_i32, %c0_i32_0 : i32, i32
  }
  func.func @transform_6(%arg0: i32) -> (i32, i32) {
    %c0_i32 = arith.constant 0 : i32
    %c0_i32_0 = arith.constant 0 : i32
    %c0_i32_1 = arith.constant 0 : i32
    return %c0_i32, %c0_i32_0 : i32, i32
  }
  func.func @transform_7(%arg0: i32) -> (i32, i32) {
    %c0_i32 = arith.constant 0 : i32
    %c0_i32_0 = arith.constant 0 : i32
    %c0_i32_1 = arith.constant 0 : i32
    return %c0_i32, %c0_i32_0 : i32, i32
  }
  func.func @transform_8(%arg0: i32) -> (i32, i32) {
    %c0_i32 = arith.constant 0 : i32
    %c0_i32_0 = arith.constant 0 : i32
    %c0_i32_1 = arith.constant 0 : i32
    return %c0_i32, %c0_i32_0 : i32, i32
  }
  func.func @transform_9(%arg0: i32) -> (i32, i32) {
    %c0_i32 = arith.constant 0 : i32
    %c0_i32_0 = arith.constant 0 : i32
    %c0_i32_1 = arith.constant 0 : i32
    return %c0_i32, %c0_i32_0 : i32, i32
  }
  func.func @transform_10(%arg0: i32) -> (i32, i32) {
    %c0_i32 = arith.constant 0 : i32
    %c0_i32_0 = arith.constant 0 : i32
    %c0_i32_1 = arith.constant 0 : i32
    return %c0_i32, %c0_i32_0 : i32, i32
  }
}

</mosaic_0001>

<bundles_post_ra>
// kernel: tpu_custom_call.1
= control target key start
LH: loop header
LB: loop body
LE: loop exit
PB: predicated region body
PF: predicated region fallthrough
CT: control target
= control target key end

     0   :  { %15 = vsyncpa [#allocation3], 0  ;;  %s1741_s0 = inlined_call_operand.hbm [shape: f32[8,6], index: 0, kind: input, shape index: {}]   ;;  %s1742_s1 = inlined_call_operand.hbm [shape: f32[8,6], index: 1, kind: input, shape index: {}]   ;;  %s1743_s2 = inlined_call_operand.vmem [shape: f32[16,8], index: 2, kind: input, shape index: {}]   ;;  %s1744_s3 = inlined_call_operand.vmem [shape: f32[13,32], index: 3, kind: input, shape index: {}]   ;;  %s1745_s4 = inlined_call_operand.vmem [shape: f32[32,16], index: 4, kind: input, shape index: {}]   ;;  %s1746_s5 = inlined_call_operand.vmem [shape: f32[16,12], index: 5, kind: input, shape index: {}]   ;;  %s1747_s6 = inlined_call_operand.hbm [shape: f32[6,16], index: 6, kind: input, shape index: {}]   ;;  %s1748_s7 = inlined_call_operand.vmem [shape: f32[16,32], index: 7, kind: input, shape index: {}]   ;;  %s1749_s8 = inlined_call_operand.vmem [shape: f32[32,84], index: 8, kind: input, shape index: {}]   ;;  %s1750_s9 = inlined_call_operand.vmem [shape: f32[1,192], index: 9, kind: input, shape index: {}]   ;;  %s1751_s10 = inlined_call_operand.hbm [shape: f32[1,1], index: 10, kind: output, shape index: {}]  }
   0x1   :  { %16 = vsyncpa [#allocation6], 0 }
   0x2   :  { %17 = vsyncpa [#allocation4], 0  ;;  %s1381_s13 = smov [#allocation5]   ;;  %s1382_s15 = smov [#allocation2]  }
   0x3   :  { %s34_s14 = sshll.u32 %s1381_s13, 4  ;;  %s24_s16 = sshll.u32 %s1382_s15, 4  ;;  %s35_s14 = int_to_ptr.vmem [resolvable:$true] %s34_s14  ;;  %s25_s16 = int_to_ptr.vmem [resolvable:$true] %s24_s16 }
   0x4   :  { %s1287_s19 = scalar_lea.hbm %s1742_s1, 128 }
   0x5   :  { %p1288_p0 = scmp.ne.s32.totalorder %s1742_s1, %s1287_s19  ;;  %p1291_p1 = scmp.lt.u32.totalorder %s1287_s19, %s1742_s1 }
   0x7   :  { %p1293_p2 = pnand %p1291_p1, %p1288_p0 }
   0x9   :  { %1296 = shalt.err (!%p1293_p2)
}
   0xa   :  { %s1297_s24 = scalar_lea.vmem %s35_s14, 128  ;;  %p1302_p4 = scmp.lt.s32.totalorder %s35_s14, %s35_s14 }
   0xb   :  { %p1298_p3 = scmp.ne.s32.totalorder %s35_s14, %s1297_s24  ;;  %p1303_p5 = scmp.lt.s32.totalorder %s1297_s24, %s1297_s24 }
   0xd   :  { %p1304_p6 = por %p1303_p5, %p1302_p4 }
   0xf   :  { %p1305_p7 = pnand %p1304_p6, %p1298_p3 }
  0x11   :  { %1308 = shalt.err (!%p1305_p7)
}
  0x12   :  { %37 = dma.hbm_to_vmem [thread:$0]  %s1742_s1, 128, %s35_s14, [#allocation6]  }
  0x13   :  { %s1309_s29 = scalar_lea.hbm %s1741_s0, 128 }
  0x14   :  { %p1310_p8 = scmp.ne.s32.totalorder %s1741_s0, %s1309_s29  ;;  %p1313_p9 = scmp.lt.u32.totalorder %s1309_s29, %s1741_s0 }
  0x16   :  { %p1315_p10 = pnand %p1313_p9, %p1310_p8 }
  0x18   :  { %1318 = shalt.err (!%p1315_p10)
}
  0x19   :  { %s1319_s15 = scalar_lea.vmem %s25_s16, 128  ;;  %p1324_p12 = scmp.lt.s32.totalorder %s25_s16, %s25_s16 }
  0x1a   :  { %p1320_p11 = scmp.ne.s32.totalorder %s25_s16, %s1319_s15  ;;  %p1325_p13 = scmp.lt.s32.totalorder %s1319_s15, %s1319_s15 }
  0x1c   :  { %p1326_p0 = por %p1325_p13, %p1324_p12 }
  0x1e   :  { %p1327_p1 = pnand %p1326_p0, %p1320_p11 }
  0x20   :  { %1330 = shalt.err (!%p1327_p1)
}
  0x21   :  { %27 = dma.hbm_to_vmem [thread:$0]  %s1741_s0, 128, %s25_s16, [#allocation3]  }
  0x22   :  { %s1383_s17 = smov [#allocation7]   ;;  %s1331_s21 = scalar_lea.hbm %s1747_s6, 128 }
  0x23   :  { %s52_s18 = sshll.u32 %s1383_s17, 4  ;;  %p1332_p2 = scmp.ne.s32.totalorder %s1747_s6, %s1331_s21  ;;  %s53_s18 = int_to_ptr.vmem [resolvable:$true] %s52_s18 }
  0x24   :  { %p1335_p3 = scmp.lt.u32.totalorder %s1331_s21, %s1747_s6 }
  0x26   :  { %p1337_p4 = pnand %p1335_p3, %p1332_p2 }
  0x28   :  { %1340 = shalt.err (!%p1337_p4)
}
  0x29   :  { %s1341_s26 = scalar_lea.vmem %s53_s18, 128  ;;  %p1346_p6 = scmp.lt.s32.totalorder %s53_s18, %s53_s18 }
  0x2a   :  { %p1342_p5 = scmp.ne.s32.totalorder %s53_s18, %s1341_s26  ;;  %p1347_p7 = scmp.lt.s32.totalorder %s1341_s26, %s1341_s26 }
  0x2c   :  { %p1348_p8 = por %p1347_p7, %p1346_p6 }
  0x2e   :  { %p1349_p9 = pnand %p1348_p8, %p1342_p5 }
  0x30   :  { %1352 = shalt.err (!%p1349_p9)
}
  0x31   :  { %55 = dma.hbm_to_vmem [thread:$0]  %s1747_s6, 128, %s53_s18, [#allocation6]  }
  0x32   :  { %1375 = dma.done.wait [#allocation3], 128  }
  0x33   :  { %1376 = vsyncadd [#allocation3], 4294967168 }
  0x34   :  { %1377 = dma.done.wait [#allocation6], 256  }
  0x35   :  { %1378 = vsyncadd [#allocation6], 4294967040  ;;  %v1384_v0 = vmov 0   ;;  %v1385_v1 = vmov 0.0|0.0   ;;  %v1386_v2 = vmov 0.0   ;;  %v1505_v3 = vld [vmem:[#allocation2] sm:$0xff]  ;;  %v80_v9 = vlaneseq }
  0x36   :  { %1243 = vset.pattern.permute.xlu0 %v1384_v0  ;;  %1189 = vmatprep.subr.bf16.mxu0 %v1385_v1  ;;  %v88_v4 = vld [vmem:[%s1743_s2] sm:$0xff]  ;;  %v89_v5 = vld [vmem:[%s1743_s2 + $0x8] sm:$0xff]  ;;  %v1210_v6 = vtrunc.f32 %v1505_v3  ;;  %vm1387_vm0 = vmmov 0   ;;  %s1388_s30 = smov 127   ;;  %vm90_vm1 = vcmask 130048   ;;  %vm172_vm3 = vcmask 1044480  }
  0x37   :  { %1143 = vmatprep.subr.mxu1 %v1386_v2  ;;  %v1190_v7 = vpack.c.bf16 %v89_v5, %v88_v4  ;;  %1135 = vmatprep.mubr.msk.f32.mxu0 %vm1387_vm0, %v1386_v2  ;;  %v1523_v10 = vand.u32 127, %v80_v9  ;;  %v165_v12 = vld [vmem:[%s1744_s3 + $0x8] sm:$0x1f]  ;;  %vm169_vm4 = vcmask 39936   ;;  %v164_v15 = vld [vmem:[%s1744_s3] sm:$0xff]  ;;  %vm246_vm5 = vcmask 64512  }
  0x38   :  { %v1514_v8 = vcvt.f32.s32 %v1210_v6  ;;  %1145 = vmatprep.mubr.msk.f32.mxu1 %vm1387_vm0, %v1386_v2  ;;  %1144 = vmatpush3.msra.mxu1 %v164_v15  ;;  %v330_v18 = vld [vmem:[%s1745_s4] sm:$0xff]  ;;  %v331_v19 = vld [vmem:[%s1745_s4 + $0x8] sm:$0xff]  ;;  %v1552_v20 = vshrl.u32 %v80_v9, 7  ;;  %v332_v24 = vld [vmem:[%s1745_s4 + $0x10] sm:$0xff]  ;;  %s1389_s23 = smov 96   ;;  %vm337_vm7 = vcmask 261120  }
  0x39   :  { %1191 = vmatpush3.bf16.msra.mxu0 %v1190_v7  ;;  %1198 = vmatprep.subr.bf16.mxu1 %v1385_v1  ;;  %v1193_v22 = vpack.c.bf16 %v331_v19, %v330_v18  ;;  %v333_v25 = vld [vmem:[%s1745_s4 + $0x18] sm:$0xff]  ;;  %v1565_v28 = vld [vmem:[%s1750_s9] sm:$0x3]  ;;  %v415_v37 = vld [vmem:[%s1746_s5 + $0x8] sm:$0xff]  ;;  %s1390_s26 = smov 80   ;;  %vm510_vm9 = vcmask 1045504  }
  0x3a   :  { %1138 = vmatprep.subr.mxu0 %v1386_v2  ;;  %83 = vperm.xlu0 %1243, %v1514_v8   ;;  %v323_v26 = vsub.s32 0, %v1552_v20  ;;  %v1196_v27 = vpack.c.bf16 %v333_v25, %v332_v24  ;;  %v414_v36 = vld [vmem:[%s1746_s5] sm:$0xff]  ;;  %v502_v51 = vld [vmem:[#allocation7] sm:$0x3f]  ;;  %s1391_s5 = smov 68   ;;  %s1392_s0 = smov 122  }
  0x3b   :  { %v1199_v38 = vpack.c.bf16 %v415_v37, %v414_v36  ;;  %v495_v53 = vld [vmem:[#allocation5] sm:$0xff]  ;;  %vm506_vm10 = vcmask 48128   ;;  %v587_v57 = vld [vmem:[%s1748_s7] sm:$0xff]  ;;  %s1393_s12 = smov 52   ;;  %v670_v9 = vld [vmem:[%s1749_s8 + $0x10] sm:$0xff]  ;;  %s1394_s3 = smov 20  }
  0x3c   :  { %v1569_v29 = vrot.slane %v1565_v28, %v323_v26  ;;  %v588_v58 = vld [vmem:[%s1748_s7 + $0x8] sm:$0xff]  ;;  %v668_v60 = vld [vmem:[%s1749_s8] sm:$0xff]  ;;  %vm680_vm13 = vcmask 162816   ;;  %vm978_vm14 = vcmask 572880   ;;  %vm914_vm15 = vcmask 277728   ;;  %s1398_s14 = smov 58  }
  0x3d   :  { %v1202_v59 = vpack.c.bf16 %v588_v58, %v587_v57  ;;  %v669_v61 = vld [vmem:[%s1749_s8 + $0x8] sm:$0xff]  ;;  %s1399_s17 = smov 70   ;;  %s1401_s18 = smov 116  }
  0x3e   :  { %167 = vrot.lane.b32.xlu0 %v1505_v3, %s1388_s30  ;;  %334 = vrot.lane.b32.xlu1 %v1569_v29, %s1389_s23  ;;  %v1205_v62 = vpack.c.bf16 %v669_v61, %v668_v60  ;;  %s1403_s19 = smov 56   ;;  %s1404_s20 = smov 12  }
  0x3f   :  { %s1405_s21 = smov 24   ;;  %s1407_s22 = smov 72  }
  0x40   :  { %s1408_s23 = smov 51   ;;  %s1409_s4 = smov 6  }
  0x41   :  { %s1410_s9 = smov 77   ;;  %s1411_s24 = smov [#allocation8]  }
  0x42   :  { %416 = vrot.lane.b32.xlu1 %v1569_v29, %s1390_s26  ;;  %s1080_s25 = sshll.u32 %s1411_s24, 4  ;;  %s1081_s25 = int_to_ptr.vmem [resolvable:$true] %s1080_s25 }
  0x43   :  { %s1353_s26 = scalar_lea.vmem %s1081_s25, 16  ;;  %p1358_p11 = scmp.lt.s32.totalorder %s1081_s25, %s1081_s25 }
  0x44   :  { %p1354_p10 = scmp.ne.s32.totalorder %s1081_s25, %s1353_s26 }
  0x46   :  { %503 = vrot.lane.b32.xlu1 %v1569_v29, %s1391_s5  ;;  %s1357_s5 = scalar_lea.vmem %s1081_s25, 32 }
  0x47   :  { %p1359_p12 = scmp.lt.s32.totalorder %s1357_s5, %s1353_s26 }
  0x49   :  { %p1360_p13 = por %p1359_p12, %p1358_p11 }
  0x4a   :  { %676 = vrot.lane.b32.xlu1 %v1569_v29, %s1394_s3 }
  0x4b   :  { %p1361_p0 = pnand %p1360_p13, %p1354_p10 }
  0xb0   :  { %v335_v39 = vpop.permute.xlu1 %334 }
  0xb4   :  { %v417_v45 = vpop.permute.xlu1 %416 }
  0xb8   :  { %v504_v63 = vpop.permute.xlu1 %503 }
  0xb9   :  { %v84_v11 = vpop.permute.xlu0 %83 }
  0xba   :  { %vm85_vm2 = vcmp.eq.s32.totalorder %v1523_v10, %v84_v11  ;;  %v671_v11 = vld [vmem:[%s1749_s8 + $0x18] sm:$0xff]  ;;  %s1397_s8 = smov 100  }
  0xbb   :  { %v1530_v13 = vsel %vm85_vm2, 1.0, %v1386_v2 }
  0xbc   :  { %1136 = vmatmul.mubr.msk.f32.vlgmr.msra.gmra.mrb[0].mxu0 %vm90_vm1, %v1530_v13 }
  0xbd   :  { %1139 = vmatpush3.msk.msra.mxu0 %vm172_vm3, %v165_v12  ;;  %1140 = vmatprep.mubr.msk.f32.mxu0 %vm1387_vm0, %v1386_v2  ;;  %v168_v14 = vpop.permute.xlu0 %167  ;;  %v1208_v12 = vpack.c.bf16 %v671_v11, %v670_v9  ;;  %v1402_v9 = vmov 3   ;;  %vm823_vm3 = vcmask 630336  }
  0xbe   :  { %1192 = vmatprep.subr.bf16.mxu0 %v1385_v1 }
  0xc0   :  { %1141 = vmatmul.mubr.msk.f32.vlgmr.msra.gmra.mrb[2].mxu0 %vm169_vm4, %v168_v14 }
  0xc1   :  { %1156 = vmatprep.mubr.msk.f32.mxu0 %vm1387_vm0, %v1386_v2  ;;  %1194 = vmatpush3.bf16.msra.mxu0 %v1193_v22  ;;  %v677_v22 = vpop.permute.xlu1 %676 }
  0xc2   :  { %1195 = vmatprep.subr.bf16.mxu0 %v1385_v1 }
  0xc5   :  { %1197 = vmatpush3.bf16.msra.mxu0 %v1196_v27 }
  0xc6   :  { %1201 = vmatprep.subr.bf16.mxu0 %v1385_v1 }
 0x18f   :  { %v160_v16 = vpop.f32.mrb[0].mxu0 }
 0x190   :  { %v1137_v17 = vpop.f32.mrb[1].mxu0  ;;  %1146 = vmatmul.mubr.msk.f32.vlgmr.msra.gmra.mrb[0].mxu1 %vm246_vm5, %v160_v16  ;;  %vm790_vm5 = vcmask 15360  }
 0x191   :  { %1163 = vmatprep.mubr.msk.f32.mxu1 %vm1387_vm0, %v1386_v2  ;;  %1200 = vmatpush3.bf16.msra.mxu1 %v1199_v38 }
 0x192   :  { %1166 = vmatprep.subr.mxu1 %v1386_v2 }
 0x193   :  { %v242_v21 = vpop.f32.mrb[2].mxu0 }
 0x194   :  { %v1142_v23 = vpop.f32.mrb[3].mxu0 }
 0x263   :  { %v316_v30 = vpop.f32.mrb[0].mxu1 }
 0x264   :  { %v317_v31 = vadd.f32 %v316_v30, %v242_v21  ;;  %v1147_v32 = vpop.f32.mrb[1].mxu1 }
 0x266   :  { %v326_v33 = vadd.f32 %v1569_v29, %v317_v31 }
 0x268   :  { %vm327_vm6 = vcmp.ge.f32.partialorder %v326_v33, 0.0  ;;  %v328_v34 = vmul.f32 0.01, %v326_v33 }
 0x26a   :  { %v329_v35 = vsel %vm327_vm6, %v326_v33, %v328_v34  ;;  %v1395_v33 = vmov 1   ;;  %v1396_v34 = vmov 5   ;;  %vm989_vm6 = vcmask 97280  }
 0x26b   :  { %1157 = vmatmul.mubr.msk.f32.vlgmr.msra.gmra.mrb[4].mxu0 %vm337_vm7, %v329_v35  ;;  %1244 = vset.pattern.permute.xlu1 %v1395_v33 }
 0x26c   :  { %1175 = vmatprep.mubr.msk.f32.mxu0 %vm1387_vm0, %v1386_v2  ;;  %1203 = vmatpush3.bf16.msra.mxu0 %v1202_v59 }
 0x26d   :  { %1245 = vset.pattern.permute.xlu0 %v1396_v34 }
 0x33e   :  { %v407_v40 = vpop.f32.mrb[4].mxu0 }
 0x33f   :  { %v408_v41 = vadd.f32 %v407_v40, %v335_v39  ;;  %v1158_v42 = vpop.f32.mrb[5].mxu0 }
 0x341   :  { %vm411_vm8 = vcmp.ge.f32.partialorder %v408_v41, 0.0  ;;  %v412_v43 = vmul.f32 0.01, %v408_v41 }
 0x343   :  { %v413_v44 = vsel %vm411_vm8, %v408_v41, %v412_v43 }
 0x344   :  { %1164 = vmatmul.mubr.msk.f32.vlgmr.msra.gmra.mrb[2].mxu1 %vm90_vm1, %v413_v44 }
 0x345   :  { %1168 = vmatprep.mubr.msk.f32.mxu1 %vm1387_vm0, %v1386_v2  ;;  %1167 = vmatpush3.msk.msra.mxu1 %vm510_vm9, %v502_v51  ;;  %vm75_vm9 = vcmask 0  }
 0x346   :  { %1204 = vmatprep.subr.bf16.mxu1 %v1385_v1  ;;  %76 = vst.msk [vmem:[#allocation8] sm:$0x1] %vm75_vm9, %v1386_v2 }
 0x417   :  { %v488_v46 = vpop.f32.mrb[2].mxu1 }
 0x418   :  { %v1587_v47 = vadd.f32 %v488_v46, %v417_v45  ;;  %v1165_v48 = vpop.f32.mrb[3].mxu1 }
 0x41a   :  { %v492_v49 = vmul.f32 0.5, %v1587_v47 }
 0x41c   :  { %v493_v50 = vmul.f32 1.442695, %v492_v49 }
 0x41e   :  { %1249 = vpow2.f32 %v493_v50  ;;  %v1400_v50 = vmov 2  }
 0x428   :  { %v1250_v52 = vpop.eup %1249 }
 0x429   :  { %497 = vrot.lane.b32.xlu0 %v1250_v52, %s1392_s0 }
 0x42d   :  { %589 = vrot.lane.b32.xlu0 %v1569_v29, %s1393_s12 }
 0x49b   :  { %v498_v54 = vpop.permute.xlu0 %497 }
 0x49c   :  { %v500_v55 = vmul.f32 %v498_v54, %v495_v53 }
 0x49e   :  { %v501_v56 = vadd.f32 %v500_v55, %v1587_v47 }
 0x49f   :  { %v590_v15 = vpop.permute.xlu0 %589 }
 0x4a0   :  { %1169 = vmatmul.mubr.msk.f32.vlgmr.msra.gmra.mrb[4].mxu1 %vm506_vm10, %v501_v56 }
 0x4a1   :  { %1186 = vmatprep.mubr.msk.f32.mxu1 %vm1387_vm0, %v1386_v2  ;;  %1206 = vmatpush3.bf16.msra.mxu1 %v1205_v62  ;;  %vm779_vm0 = vcmask 589360  }
 0x4a2   :  { %1207 = vmatprep.subr.bf16.mxu1 %v1385_v1  ;;  %v674_v1 = vsub.s32 1, %v1552_v20 }
 0x4a4   :  { %v675_v14 = vrot.slane %v1565_v28, %v674_v1 }
 0x4a5   :  { %1209 = vmatpush3.bf16.msra.mxu1 %v1208_v12 }
 0x4a6   :  { %678 = vrot.lane.b32.xlu0 %v675_v14, %s1394_s3 }
 0x518   :  { %v679_v23 = vpop.permute.xlu0 %678 }
 0x519   :  { %v681_v24 = vsel %vm680_vm13, %v677_v22, %v679_v23 }
 0x573   :  { %v580_v0 = vpop.f32.mrb[4].mxu1 }
 0x574   :  { %v581_v4 = vadd.f32 %v580_v0, %v504_v63  ;;  %v1170_v5 = vpop.f32.mrb[5].mxu1 }
 0x576   :  { %vm584_vm11 = vcmp.ge.f32.partialorder %v581_v4, 0.0  ;;  %v585_v6 = vmul.f32 0.01, %v581_v4 }
 0x578   :  { %v586_v7 = vsel %vm584_vm11, %v581_v4, %v585_v6 }
 0x579   :  { %1176 = vmatmul.mubr.msk.f32.vlgmr.msra.gmra.mrb[6].mxu0 %vm90_vm1, %v586_v7 }
 0x64c   :  { %v661_v16 = vpop.f32.mrb[6].mxu0 }
 0x64d   :  { %v662_v17 = vadd.f32 %v661_v16, %v590_v15  ;;  %v1177_v18 = vpop.f32.mrb[7].mxu0 }
 0x64f   :  { %vm665_vm12 = vcmp.ge.f32.partialorder %v662_v17, 0.0  ;;  %v666_v19 = vmul.f32 0.01, %v662_v17 }
 0x651   :  { %v667_v21 = vsel %vm665_vm12, %v662_v17, %v666_v19 }
 0x652   :  { %1187 = vmatmul.mubr.msk.f32.vlgmr.msra.gmra.mrb[6].mxu1 %vm337_vm7, %v667_v21  ;;  %vm866_vm7 = vcmask 687720  }
 0x725   :  { %v752_v20 = vpop.f32.mrb[6].mxu1 }
 0x726   :  { %v1622_v25 = vadd.f32 %v752_v20, %v681_v24  ;;  %v1188_v26 = vpop.f32.mrb[7].mxu1 }
 0x728   :  { %v979_v27 = vsel %vm978_vm14, %v1622_v25, -inf  ;;  %v915_v28 = vsel %vm914_vm15, %v1622_v25, -inf  ;;  %v780_v29 = vsel %vm779_vm0, %v1622_v25, -inf  ;;  %v756_v30 = vsel %vm90_vm1, %v1622_v25, -inf }
 0x729   :  { %980 = vmax.xlane.f32.xlu0 %v979_v27  ;;  %916 = vmax.xlane.f32.xlu1 %v915_v28  ;;  %v768_v31 = vmul.f32 %v1530_v13, %v1622_v25  ;;  %v910_v42 = vmul.f32 0.5, %v1622_v25  ;;  %v824_v11 = vsel %vm823_vm3, %v1622_v25, -inf }
 0x72b   :  { %v769_v32 = vsel %vm90_vm1, %v768_v31, 0.0  ;;  %v911_v44 = vsub.f32 0.0, %v910_v42 }
 0x72d   :  { %781 = vmax.xlane.f32.xlu1 %v780_v29  ;;  %757 = vmax.xlane.f32.xlu0 %v756_v30  ;;  %v912_v45 = vmul.f32 1.442695, %v911_v44 }
 0x731   :  { %770 = vadd.xlane.f32.xlu0 %v769_v32 }
 0x7b6   :  { %v1634_v35 = vpop.xlane.xlu1 %916  ;;  %v1638_v37 = vpop.xlane.xlu0 %980 }
 0x7b7   :  { %v918_v36 = vsub.f32 %v1622_v25, %v1634_v35  ;;  %v982_v13 = vsub.f32 %v1622_v25, %v1638_v37 }
 0x7b9   :  { %v919_v38 = vmul.f32 1.442695, %v918_v36  ;;  %v983_v43 = vmul.f32 1.442695, %v982_v13 }
 0x7ba   :  { %v1640_v39 = vpop.xlane.xlu1 %781  ;;  %v1655_v52 = vpop.xlane.xlu0 %757 }
 0x7bb   :  { %v783_v40 = vsub.f32 %v1622_v25, %v1640_v39  ;;  %1251 = vpow2.f32 %v919_v38  ;;  %v759_v12 = vsub.f32 %v1622_v25, %v1655_v52 }
 0x7bd   :  { %v784_v41 = vmul.f32 1.442695, %v783_v40  ;;  %v760_v1 = vmul.f32 1.442695, %v759_v12 }
 0x7be   :  { %v1657_v53 = vpop.xlane.xlu0 %770 }
 0x7bf   :  { %1253 = vpow2.f32 %v784_v41  ;;  %v1406_v41 = vmov 4  }
 0x7c0   :  { %1255 = vpow2.f32 %v983_v43 }
 0x7c1   :  { %1257 = vpow2.f32 %v912_v45 }
 0x7c2   :  { %1259 = vpow2.f32 %v760_v1 }
 0x7c5   :  { %v1252_v46 = vpop.eup %1251 }
 0x7c6   :  { %922 = vrot.lane.b32.xlu1 %v1252_v46, %s1397_s8 }
 0x7c9   :  { %v1254_v48 = vpop.eup %1253 }
 0x7ca   :  { %787 = vrot.lane.b32.xlu0 %v1254_v48, %s1398_s14  ;;  %933 = vperm.xlu1 %1244, %v1505_v3   ;;  %v1256_v49 = vpop.eup %1255 }
 0x7cb   :  { %v1258_v51 = vpop.eup %1257 }
 0x7cc   :  { %v1260_v17 = vpop.eup %1259 }
 0x7cd   :  { %v762_v18 = vsel %vm90_vm1, %v1260_v17, 0.0 }
 0x7ce   :  { %986 = vrot.lane.b32.xlu0 %v1256_v49, %s1399_s17  ;;  %1246 = vset.pattern.permute.xlu1 %v1400_v50 }
 0x7cf   :  { %798 = vperm.xlu1 %1246, %v1514_v8  }
 0x7d2   :  { %998 = vperm.xlu0 %1245, %v1505_v3  }
 0x7d3   :  { %938 = vrot.lane.b32.xlu1 %v1258_v51, %s1392_s0 }
 0x7d4   :  { %1247 = vset.pattern.permute.xlu1 %v1402_v9 }
 0x7d6   :  { %1002 = vrot.lane.b32.xlu0 %v1258_v51, %s1401_s18 }
 0x7d7   :  { %945 = vrot.lane.b32.xlu1 %v910_v42, %s1392_s0 }
 0x7da   :  { %1008 = vrot.lane.b32.xlu0 %v910_v42, %s1401_s18 }
 0x838   :  { %v923_v54 = vpop.permute.xlu1 %922 }
 0x839   :  { %v925_v21 = vsel %vm506_vm10, %v923_v54, 0.0 }
 0x83c   :  { %v788_v55 = vpop.permute.xlu0 %787 }
 0x83d   :  { %v791_v19 = vsel %vm790_vm5, %v788_v55, 0.0 }
 0x840   :  { %v987_v57 = vpop.permute.xlu0 %986 }
 0x841   :  { %v990_v22 = vsel %vm989_vm6, %v987_v57, 0.0 }
 0x849   :  { %v934_v56 = vpop.permute.xlu1 %933 }
 0x84a   :  { %v936_v60 = vsub.f32 %v934_v56, %v1622_v25 }
 0x84e   :  { %v799_v58 = vpop.permute.xlu1 %798 }
 0x84f   :  { %vm800_vm2 = vcmp.eq.s32.totalorder %v1523_v10, %v799_v58 }
 0x850   :  { %v1101_v3 = vsel %vm800_vm2, 1.0, %v1386_v2 }
 0x851   :  { %v999_v59 = vpop.permute.xlu0 %998  ;;  %804 = vrot.lane.b32.xlu1 %v1101_v3, %s1399_s17 }
 0x852   :  { %v939_v61 = vpop.permute.xlu1 %938  ;;  %v1001_v62 = vsub.f32 %v999_v59, %v1622_v25 }
 0x853   :  { %v941_v63 = vmul.f32 %v939_v61, %v936_v60 }
 0x855   :  { %v1003_v0 = vpop.permute.xlu0 %1002  ;;  %v942_v26 = vmul.f32 %v941_v63, %v941_v63 }
 0x856   :  { %v1005_v4 = vmul.f32 %v1003_v0, %v1001_v62  ;;  %v946_v5 = vpop.permute.xlu1 %945 }
 0x857   :  { %v943_v27 = vmul.f32 -0.5, %v942_v26 }
 0x858   :  { %v1006_v28 = vmul.f32 %v1005_v4, %v1005_v4 }
 0x859   :  { %v1009_v14 = vpop.permute.xlu0 %1008  ;;  %v948_v30 = vsub.f32 %v943_v27, %v946_v5 }
 0x85a   :  { %v1007_v29 = vmul.f32 -0.5, %v1006_v28 }
 0x85b   :  { %v1104_v32 = vadd.f32 -0.9189385, %v948_v30 }
 0x85c   :  { %v1011_v33 = vsub.f32 %v1007_v29, %v1009_v14 }
 0x85e   :  { %v1105_v34 = vadd.f32 -0.9189385, %v1011_v33 }
 0x8c3   :  { %v805_v6 = vpop.permute.xlu1 %804 }
 0x8c4   :  { %v807_v7 = vmul.f32 %v805_v6, %v1622_v25 }
 0x8c6   :  { %809 = vrot.lane.b32.xlu0 %v807_v7, %s1398_s14 }
 0x8e5   :  { %825 = vmax.xlane.f32.xlu0 %v824_v11 }
 0x938   :  { %v810_v15 = vpop.permute.xlu0 %809 }
 0x939   :  { %v812_v16 = vsel %vm790_vm5, %v810_v15, 0.0 }
 0x93a   :  { %813 = vadd.xlane.f32.xlu1 %v812_v16  ;;  %v867_v16 = vsel %vm866_vm7, %v1622_v25, -inf }
 0x93e   :  { %763 = vadd.xlane.f32.xlu1 %v762_v18 }
 0x942   :  { %792 = vadd.xlane.f32.xlu1 %v791_v19 }
 0x946   :  { %926 = vadd.xlane.f32.xlu1 %v925_v21 }
 0x94a   :  { %991 = vadd.xlane.f32.xlu1 %v990_v22 }
 0x95b   :  { %841 = vperm.xlu1 %1247, %v1514_v8  }
 0x95f   :  { %1248 = vset.pattern.permute.xlu1 %v1406_v41 }
 0x972   :  { %v1673_v23 = vpop.xlane.xlu0 %825 }
 0x973   :  { %v827_v24 = vsub.f32 %v1622_v25, %v1673_v23 }
 0x975   :  { %v828_v20 = vmul.f32 1.442695, %v827_v24 }
 0x977   :  { %1261 = vpow2.f32 %v828_v20 }
 0x981   :  { %v1262_v31 = vpop.eup %1261 }
 0x982   :  { %831 = vrot.lane.b32.xlu0 %v1262_v31, %s1403_s19  ;;  %v1042_v31 = vmul.f32 %v1587_v47, %v1587_v47 }
 0x986   :  { %951 = vrot.lane.b32.xlu0 %v1104_v32, %s1404_s20 }
 0x98a   :  { %1014 = vrot.lane.b32.xlu0 %v1105_v34, %s1405_s21 }
 0x9c7   :  { %v814_v36 = vpop.xlane.xlu1 %813 }
 0x9cb   :  { %v764_v38 = vpop.xlane.xlu1 %763 }
 0x9cc   :  { %1263 = vlog2.f32 %v764_v38 }
 0x9cf   :  { %v793_v13 = vpop.xlane.xlu1 %792 }
 0x9d0   :  { %1265 = vlog2.f32 %v793_v13 }
 0x9d3   :  { %v927_v40 = vpop.xlane.xlu1 %926 }
 0x9d4   :  { %1267 = vlog2.f32 %v927_v40 }
 0x9d6   :  { %v1264_v42 = vpop.eup %1263 }
 0x9d7   :  { %v766_v43 = vmul.f32 0.6931472, %v1264_v42  ;;  %v992_v44 = vpop.xlane.xlu1 %991 }
 0x9d8   :  { %1269 = vlog2.f32 %v992_v44 }
 0x9d9   :  { %v767_v45 = vadd.f32 %v766_v43, %v1655_v52 }
 0x9da   :  { %v1266_v46 = vpop.eup %1265 }
 0x9db   :  { %v772_v48 = vsub.f32 %v767_v45, %v1657_v53  ;;  %v795_v49 = vmul.f32 0.6931472, %v1266_v46  ;;  %v842_v50 = vpop.permute.xlu1 %841 }
 0x9dc   :  { %vm843_vm1 = vcmp.eq.s32.totalorder %v1523_v10, %v842_v50 }
 0x9dd   :  { %v773_v51 = vrot.slane %v772_v48, 4  ;;  %v796_v54 = vadd.f32 %v795_v49, %v1640_v39  ;;  %v1102_v55 = vsel %vm843_vm1, 1.0, %v1386_v2 }
 0x9de   :  { %847 = vrot.lane.b32.xlu0 %v1102_v55, %s1407_s22  ;;  %v1268_v4 = vpop.eup %1267 }
 0x9df   :  { %v774_v56 = vadd.f32 %v773_v51, %v772_v48  ;;  %v815_v57 = vsub.f32 %v796_v54, %v814_v36  ;;  %v929_v39 = vmul.f32 0.6931472, %v1268_v4 }
 0x9e1   :  { %v775_v58 = vrot.slane %v774_v56, 2  ;;  %v816_v3 = vrot.slane %v815_v57, 4  ;;  %v930_v6 = vadd.f32 %v929_v39, %v1634_v35 }
 0x9e2   :  { %v1270_v35 = vpop.eup %1269 }
 0x9e3   :  { %v776_v52 = vadd.f32 %v775_v58, %v774_v56  ;;  %v817_v59 = vadd.f32 %v816_v3, %v815_v57  ;;  %v931_v9 = vsub.f32 %v1622_v25, %v930_v6  ;;  %v994_v18 = vmul.f32 0.6931472, %v1270_v35 }
 0x9e5   :  { %v818_v60 = vrot.slane %v817_v59, 2  ;;  %v777_v53 = vrot.slane %v776_v52, 1  ;;  %v995_v19 = vadd.f32 %v994_v18, %v1638_v37 }
 0x9e7   :  { %v819_v61 = vadd.f32 %v818_v60, %v817_v59  ;;  %v778_v63 = vadd.f32 %v777_v53, %v776_v52  ;;  %v996_v24 = vsub.f32 %v1622_v25, %v995_v19 }
 0x9e9   :  { %v820_v62 = vrot.slane %v819_v61, 1 }
 0x9eb   :  { %v821_v0 = vadd.f32 %v820_v62, %v819_v61 }
 0x9ed   :  { %v822_v5 = vadd.f32 %v821_v0, %v778_v63  ;;  %v1048_v63 = vmul.f32 1.442695, %v1587_v47 }
 0x9f4   :  { %v832_v7 = vpop.permute.xlu0 %831 }
 0x9f5   :  { %v834_v17 = vsel %vm169_vm4, %v832_v7, 0.0 }
 0x9f8   :  { %v952_v11 = vpop.permute.xlu0 %951 }
 0x9f9   :  { %v954_v12 = vadd.f32 %v952_v11, %v931_v9 }
 0x9fc   :  { %v1015_v1 = vpop.permute.xlu0 %1014 }
 0x9fd   :  { %v1017_v20 = vadd.f32 %v1015_v1, %v996_v24 }
 0x9ff   :  { %v1018_v26 = vsel %vm978_vm14, %v1017_v20, -inf }
 0xa50   :  { %v848_v14 = vpop.permute.xlu0 %847 }
 0xa51   :  { %v850_v15 = vmul.f32 %v848_v14, %v1622_v25 }
 0xa53   :  { %852 = vrot.lane.b32.xlu1 %v850_v15, %s1403_s19 }
 0xa57   :  { %885 = vperm.xlu1 %1248, %v1514_v8   ;;  %v955_v8 = vsel %vm914_vm15, %v954_v12, -inf }
 0xa7b   :  { %868 = vmax.xlane.f32.xlu1 %v867_v16 }
 0xa7f   :  { %835 = vadd.xlane.f32.xlu1 %v834_v17 }
 0xac5   :  { %v853_v21 = vpop.permute.xlu1 %852 }
 0xac6   :  { %v855_v22 = vsel %vm169_vm4, %v853_v21, 0.0  ;;  %vm877_vm4 = vcmask 56320  }
 0xac7   :  { %856 = vadd.xlane.f32.xlu0 %v855_v22 }
 0xacb   :  { %956 = vmax.xlane.f32.xlu0 %v955_v8 }
 0xacf   :  { %1019 = vmax.xlane.f32.xlu0 %v1018_v26 }
 0xad6   :  { %v886_v27 = vpop.permute.xlu1 %885 }
 0xad7   :  { %vm887_vm8 = vcmp.eq.s32.totalorder %v1523_v10, %v886_v27 }
 0xb08   :  { %v1695_v28 = vpop.xlane.xlu1 %868 }
 0xb09   :  { %v870_v29 = vsub.f32 %v1622_v25, %v1695_v28 }
 0xb0b   :  { %v871_v37 = vmul.f32 1.442695, %v870_v29 }
 0xb0c   :  { %v836_v32 = vpop.xlane.xlu1 %835 }
 0xb0d   :  { %1271 = vpow2.f32 %v871_v37 }
 0xb0e   :  { %1273 = vlog2.f32 %v836_v32 }
 0xb17   :  { %v1272_v30 = vpop.eup %1271 }
 0xb18   :  { %874 = vrot.lane.b32.xlu0 %v1272_v30, %s1408_s23  ;;  %v1274_v33 = vpop.eup %1273 }
 0xb19   :  { %v838_v34 = vmul.f32 0.6931472, %v1274_v33 }
 0xb1b   :  { %v839_v36 = vadd.f32 %v838_v34, %v1673_v23  ;;  %v1103_v23 = vsel %vm887_vm8, 1.0, %v1386_v2 }
 0xb1c   :  { %1044 = vrot.lane.b32.xlu0 %v1042_v31, %s1409_s4 }
 0xb54   :  { %v857_v38 = vpop.xlane.xlu0 %856 }
 0xb55   :  { %v858_v13 = vsub.f32 %v839_v36, %v857_v38 }
 0xb57   :  { %v859_v40 = vrot.slane %v858_v13, 4 }
 0xb58   :  { %v1703_v48 = vpop.xlane.xlu0 %956 }
 0xb59   :  { %v860_v41 = vadd.f32 %v859_v40, %v858_v13  ;;  %v958_v54 = vsub.f32 %v954_v12, %v1703_v48 }
 0xb5b   :  { %v861_v42 = vrot.slane %v860_v41, 2  ;;  %v959_v55 = vmul.f32 1.442695, %v958_v54 }
 0xb5c   :  { %v1705_v49 = vpop.xlane.xlu0 %1019 }
 0xb5d   :  { %v862_v43 = vadd.f32 %v861_v42, %v860_v41  ;;  %v1021_v56 = vsub.f32 %v1017_v20, %v1705_v49  ;;  %1275 = vpow2.f32 %v959_v55 }
 0xb5f   :  { %v863_v44 = vrot.slane %v862_v43, 1  ;;  %v1022_v57 = vmul.f32 1.442695, %v1021_v56 }
 0xb61   :  { %v864_v45 = vadd.f32 %v863_v44, %v862_v43  ;;  %1277 = vpow2.f32 %v1022_v57 }
 0xb62   :  { %1279 = vpow2.f32 %v1048_v63 }
 0xb63   :  { %v865_v46 = vadd.f32 %v864_v45, %v822_v5  ;;  %v1041_v5 = vadd.f32 1.0, %v1587_v47 }
 0xb67   :  { %v1276_v59 = vpop.eup %1275 }
 0xb6b   :  { %v1278_v10 = vpop.eup %1277 }
 0xb6c   :  { %v1280_v6 = vpop.eup %1279 }
 0xb8a   :  { %v875_v50 = vpop.permute.xlu0 %874 }
 0xb8b   :  { %v878_v51 = vsel %vm877_vm4, %v875_v50, 0.0 }
 0xb8c   :  { %879 = vadd.xlane.f32.xlu1 %v878_v51 }
 0xb8e   :  { %v1045_v4 = vpop.permute.xlu0 %1044 }
 0xb8f   :  { %v1047_v39 = vsub.f32 %v1041_v5, %v1045_v4 }
 0xb91   :  { %v1050_v7 = vsub.f32 %v1047_v39, %v1280_v6 }
 0xb9d   :  { %891 = vrot.lane.b32.xlu1 %v1103_v23, %s1410_s9 }
 0xc19   :  { %v880_v58 = vpop.xlane.xlu1 %879 }
 0xc1a   :  { %1281 = vlog2.f32 %v880_v58 }
 0xc1d   :  { %v892_v3 = vpop.permute.xlu1 %891 }
 0xc1e   :  { %v894_v52 = vmul.f32 %v892_v3, %v1622_v25  ;;  %v1065_v3 = vld [vmem:[#allocation8] sm:$0x1] }
 0xc20   :  { %896 = vrot.lane.b32.xlu1 %v894_v52, %s1408_s23 }
 0xc24   :  { %962 = vrot.lane.b32.xlu1 %v1276_v59, %s1397_s8  ;;  %v1282_v9 = vpop.eup %1281 }
 0xc25   :  { %v882_v11 = vmul.f32 0.6931472, %v1282_v9 }
 0xc27   :  { %v883_v12 = vadd.f32 %v882_v11, %v1695_v28 }
 0xc28   :  { %1025 = vrot.lane.b32.xlu1 %v1278_v10, %s1399_s17 }
 0xc92   :  { %v897_v60 = vpop.permute.xlu1 %896 }
 0xc93   :  { %v899_v53 = vsel %vm877_vm4, %v897_v60, 0.0 }
 0xc94   :  { %900 = vadd.xlane.f32.xlu0 %v899_v53 }
 0xc96   :  { %v963_v61 = vpop.permute.xlu1 %962 }
 0xc97   :  { %v965_v62 = vsel %vm506_vm10, %v963_v61, 0.0 }
 0xc98   :  { %966 = vadd.xlane.f32.xlu1 %v965_v62 }
 0xc9a   :  { %v1026_v0 = vpop.permute.xlu1 %1025 }
 0xc9b   :  { %v1028_v25 = vsel %vm989_vm6, %v1026_v0, 0.0 }
 0xc9c   :  { %1029 = vadd.xlane.f32.xlu1 %v1028_v25 }
 0xcaa   :  { %1052 = vrot.lane.b32.xlu0 %v1050_v7, %s1392_s0 }
 0xd21   :  { %v901_v1 = vpop.xlane.xlu0 %900 }
 0xd22   :  { %v902_v14 = vsub.f32 %v883_v12, %v901_v1 }
 0xd24   :  { %v903_v15 = vrot.slane %v902_v14, 4 }
 0xd25   :  { %v1053_v16 = vpop.permute.xlu0 %1052  ;;  %v967_v24 = vpop.xlane.xlu1 %966 }
 0xd26   :  { %v904_v17 = vadd.f32 %v903_v15, %v902_v14  ;;  %v1055_v35 = vsel %vm506_vm10, %v1053_v16, 0.0  ;;  %1283 = vlog2.f32 %v967_v24 }
 0xd27   :  { %1056 = vadd.xlane.f32.xlu1 %v1055_v35 }
 0xd28   :  { %v905_v18 = vrot.slane %v904_v17, 2 }
 0xd29   :  { %v1030_v20 = vpop.xlane.xlu1 %1029 }
 0xd2a   :  { %v906_v47 = vadd.f32 %v905_v18, %v904_v17  ;;  %1285 = vlog2.f32 %v1030_v20 }
 0xd2c   :  { %v907_v19 = vrot.slane %v906_v47, 1 }
 0xd2e   :  { %v908_v21 = vadd.f32 %v907_v19, %v906_v47 }
 0xd30   :  { %v909_v22 = vadd.f32 %v908_v21, %v865_v46  ;;  %v1284_v8 = vpop.eup %1283 }
 0xd31   :  { %v969_v27 = vmul.f32 0.6931472, %v1284_v8 }
 0xd32   :  { %v1066_v50 = vmul.f32 0.25, %v909_v22 }
 0xd33   :  { %v970_v29 = vadd.f32 %v969_v27, %v1703_v48 }
 0xd34   :  { %v1286_v26 = vpop.eup %1285 }
 0xd35   :  { %v1032_v28 = vmul.f32 0.6931472, %v1286_v26  ;;  %v971_v30 = vrot.slane %v970_v29, 4 }
 0xd37   :  { %v1033_v37 = vadd.f32 %v1032_v28, %v1705_v49  ;;  %v972_v32 = vadd.f32 %v971_v30, %v970_v29 }
 0xd39   :  { %v1034_v31 = vrot.slane %v1033_v37, 4  ;;  %v973_v34 = vrot.slane %v972_v32, 2 }
 0xd3b   :  { %v1035_v33 = vadd.f32 %v1034_v31, %v1033_v37  ;;  %v974_v38 = vadd.f32 %v973_v34, %v972_v32 }
 0xd3d   :  { %v1036_v36 = vrot.slane %v1035_v33, 2  ;;  %v975_v13 = vrot.slane %v974_v38, 1 }
 0xd3f   :  { %v1037_v2 = vadd.f32 %v1036_v36, %v1035_v33  ;;  %v976_v41 = vadd.f32 %v975_v13, %v974_v38 }
 0xd41   :  { %v1038_v40 = vrot.slane %v1037_v2, 1  ;;  %v977_v45 = vsub.f32 0.0, %v976_v41 }
 0xd43   :  { %v1039_v43 = vadd.f32 %v1038_v40, %v1037_v2  ;;  %v1067_v49 = vadd.f32 %v1066_v50, %v977_v45 }
 0xd45   :  { %v1040_v48 = vsub.f32 0.0, %v1039_v43 }
 0xd47   :  { %v1068_v54 = vadd.f32 %v1067_v49, %v1040_v48 }
 0xd49   :  { %v1069_v57 = vmul.f32 0.125, %v1068_v54 }
 0xdb4   :  { %v1057_v42 = vpop.xlane.xlu1 %1056 }
 0xdb5   :  { %v1058_v44 = vrot.slane %v1057_v42, 4 }
 0xdb7   :  { %v1059_v46 = vadd.f32 %v1058_v44, %v1057_v42 }
 0xdb9   :  { %v1060_v51 = vrot.slane %v1059_v46, 2 }
 0xdbb   :  { %v1061_v23 = vadd.f32 %v1060_v51, %v1059_v46 }
 0xdbd   :  { %v1062_v55 = vrot.slane %v1061_v23, 1 }
 0xdbf   :  { %v1063_v56 = vadd.f32 %v1062_v55, %v1061_v23 }
 0xdc1   :  { %v1064_v58 = vmul.f32 -0.5, %v1063_v56 }
 0xdc3   :  { %v1070_v52 = vadd.f32 %v1069_v57, %v1064_v58 }
 0xdc5   :  { %v1071_v59 = vadd.f32 %v1070_v52, %v1065_v3 }
 0xdc7   :  { %1073 = vst.msk [vmem:[#allocation8] sm:$0x1] %vm75_vm9, %v1071_v59 }
 0xdc8   :  { %1364 = shalt.err (!%p1361_p0)
}
 0xdc9   :  { %s1365_s27 = scalar_lea.hbm %s1751_s10, 16 }
 0xdca   :  { %p1366_p1 = scmp.ne.s32.totalorder %s1751_s10, %s1365_s27  ;;  %p1369_p2 = scmp.lt.u32.totalorder %s1365_s27, %s1751_s10 }
 0xdcc   :  { %p1371_p3 = pnand %p1369_p2, %p1366_p1 }
 0xdce   :  { %1374 = shalt.err (!%p1371_p3)
}
 0xdcf   :  { %1083 = dma.vmem_to_hbm [thread:$0]  %s1081_s25, 16, %s1751_s10, [#allocation4]  }
 0xdd0   :  { %1379 = dma.done.wait [#allocation4], 16  }
 0xdd1   :  { %1380 = vsyncadd [#allocation4], 4294967280 }
 0xdd2   :  { %1087 = vsyncpa [#allocation3], 1 }
 0xdd3   :  { %1088 = vsyncpa [#allocation6], 1 }
 0xdd4   :  { %1089 = vsyncpa [#allocation4], 1 }

</bundles_post_ra>
